<compile_context>
chip_gen: v6e
topology: v6e:2x2x1
jax: 0.10.0
libtpu: 0.0.40
codegen_flags: <defaults>
</compile_context>

<pallas_src>
import jax
import jax.numpy as jnp
from jax.experimental import pallas as pl
from jax.experimental.pallas import tpu as pltpu

# ---------------- model hyper-parameters (small, synthetic) -----------------
SEQ = 8        # L
BATCH = 2      # N
D_MODEL = 32   # D
N_HEAD = 4     # H
HEAD_DIM = D_MODEL // N_HEAD
D_FF = 4 * D_MODEL
LN_EPS = 1e-5

# rows of the packed (8, 128) vector-parameter tile
_ROW_G1, _ROW_B1, _ROW_G2, _ROW_B2, _ROW_BO, _ROW_BPR, _ROW_BQKV, _ROW_BFC = range(8)


def _layernorm(v, gamma, beta):
    mu = jnp.mean(v, axis=-1, keepdims=True)
    var = jnp.mean((v - mu) ** 2, axis=-1, keepdims=True)
    return (v - mu) * jax.lax.rsqrt(var + LN_EPS) * gamma + beta


def _residual_block_kernel(x_ref, vec_ref, wqkv_ref, wo_ref, wfc_ref, wpr_ref,
                           o_ref):
    # x_ref: full (L, N, D) slab; flatten to (L*N, D) rows for all row-wise ops.
    x = x_ref[...].astype(jnp.float32).reshape(SEQ * BATCH, D_MODEL)

    vec = vec_ref[...]                                     # (8, 128) packed params
    g1 = vec[_ROW_G1:_ROW_G1 + 1, :D_MODEL]
    b1 = vec[_ROW_B1:_ROW_B1 + 1, :D_MODEL]
    g2 = vec[_ROW_G2:_ROW_G2 + 1, :D_MODEL]
    b2 = vec[_ROW_B2:_ROW_B2 + 1, :D_MODEL]
    bo = vec[_ROW_BO:_ROW_BO + 1, :D_MODEL]
    bpr = vec[_ROW_BPR:_ROW_BPR + 1, :D_MODEL]
    bqkv = vec[_ROW_BQKV:_ROW_BQKV + 1, :3 * D_MODEL]
    bfc = vec[_ROW_BFC:_ROW_BFC + 1, :D_FF]

    # ---- attention branch: ln_1 -> QKV -> batched SDPA -> out-proj ----------
    h = _layernorm(x, g1, b1)                              # (L*N, D)
    qkv = jnp.dot(h, wqkv_ref[...],
                  preferred_element_type=jnp.float32) + bqkv    # (L*N, 3D)
    q = qkv[:, 0 * D_MODEL:1 * D_MODEL]                    # Q already pre-scaled
    k = qkv[:, 1 * D_MODEL:2 * D_MODEL]
    v = qkv[:, 2 * D_MODEL:3 * D_MODEL]

    def to_heads(t):
        # (L*N, D) -> (L, N, H, hd) -> (N, H, L, hd) -> (N*H, L, hd); one
        # relayout per operand, then the contraction is a plain batched matmul.
        t = t.reshape(SEQ, BATCH, N_HEAD, HEAD_DIM)
        return jnp.transpose(t, (1, 2, 0, 3)).reshape(BATCH * N_HEAD, SEQ, HEAD_DIM)

    qh = to_heads(q)
    kh = to_heads(k)
    vh = to_heads(v)

    # scores[b, l, m] = qh[b, l, :] . kh[b, m, :]   (b = n*H + h)
    scores = jax.lax.dot_general(
        qh, kh,
        dimension_numbers=(((2,), (2,)), ((0,), (0,))),
        preferred_element_type=jnp.float32)                # (N*H, L, L)
    scores = scores - jnp.max(scores, axis=-1, keepdims=True)
    p = jnp.exp(scores)
    p = p * pl.reciprocal(jnp.sum(p, axis=-1, keepdims=True), approx=True)

    ctx = jax.lax.dot_general(
        p, vh,
        dimension_numbers=(((2,), (1,)), ((0,), (0,))),
        preferred_element_type=jnp.float32)                # (N*H, L, hd)
    ctx = jnp.transpose(ctx.reshape(BATCH, N_HEAD, SEQ, HEAD_DIM),
                        (2, 0, 1, 3)).reshape(SEQ * BATCH, D_MODEL)

    attn_out = jnp.dot(ctx, wo_ref[...],
                       preferred_element_type=jnp.float32) + bo
    x1 = x + attn_out                                      # residual 1

    # ---- MLP branch: ln_2 -> c_fc -> QuickGELU -> c_proj --------------------
    h2 = _layernorm(x1, g2, b2)
    fc = jnp.dot(h2, wfc_ref[...],
                 preferred_element_type=jnp.float32) + bfc      # (L*N, 4D)
    gelu = fc * jax.nn.sigmoid(1.702 * fc)                 # QuickGELU
    mlp = jnp.dot(gelu, wpr_ref[...],
                  preferred_element_type=jnp.float32) + bpr     # (L*N, D)

    out = (x1 + mlp).reshape(SEQ, BATCH, D_MODEL)
    o_ref[...] = out.astype(o_ref.dtype)                   # residual 2


def _full_block(shape):
    n = len(shape)
    return pl.BlockSpec(shape, lambda i, _n=n: (0,) * _n)


def residual_attention_block(x_lnd, kp):
    """x_lnd: (L, N, D) float32, matching the PyTorch module's convention."""
    args = (x_lnd, kp['vecs'], kp['wqkv'], kp['wo'], kp['wfc'], kp['wpr'])
    return pl.pallas_call(
        _residual_block_kernel,
        out_shape=jax.ShapeDtypeStruct((SEQ, BATCH, D_MODEL), x_lnd.dtype),
        grid=(1,),                                         # single invocation
        in_specs=[_full_block(a.shape) for a in args],
        out_specs=_full_block((SEQ, BATCH, D_MODEL)),
        compiler_params=pltpu.CompilerParams(
            dimension_semantics=("arbitrary",)),
    )(*args)


# ----------------------- PyTorch-style parameter init ------------------------
def init_params(key):
    ks = jax.random.split(key, 8)
    scale = 0.02
    # PyTorch nn.Linear / in_proj weights are (out_features, in_features).
    return {
        'ln1_g': jnp.ones((D_MODEL,), jnp.float32),
        'ln1_b': jnp.zeros((D_MODEL,), jnp.float32),
        'in_proj_w': scale * jax.random.normal(ks[0], (3 * D_MODEL, D_MODEL), jnp.float32),
        'in_proj_b': scale * jax.random.normal(ks[1], (3 * D_MODEL,), jnp.float32),
        'out_proj_w': scale * jax.random.normal(ks[2], (D_MODEL, D_MODEL), jnp.float32),
        'out_proj_b': scale * jax.random.normal(ks[3], (D_MODEL,), jnp.float32),
        'ln2_g': jnp.ones((D_MODEL,), jnp.float32),
        'ln2_b': jnp.zeros((D_MODEL,), jnp.float32),
        'c_fc_w': scale * jax.random.normal(ks[4], (D_FF, D_MODEL), jnp.float32),
        'c_fc_b': scale * jax.random.normal(ks[5], (D_FF,), jnp.float32),
        'c_proj_w': scale * jax.random.normal(ks[6], (D_MODEL, D_FF), jnp.float32),
        'c_proj_b': scale * jax.random.normal(ks[7], (D_MODEL,), jnp.float32),
    }


def prepare_kernel_params(p):
    """One-time layout/packing work done in plain JAX (outside the hot path)."""
    # Pre-transpose weights to (in, out) so the kernel computes x @ W directly,
    # and fold the attention scale into the Q rows of the QKV projection.
    head_scale = HEAD_DIM ** -0.5
    scale_vec = jnp.concatenate([
        jnp.full((D_MODEL,), head_scale, jnp.float32),
        jnp.ones((2 * D_MODEL,), jnp.float32)])
    wqkv = p['in_proj_w'].T * scale_vec[None, :]           # (D, 3D)
    bqkv = p['in_proj_b'] * scale_vec                      # (3D,)

    def pad128(v):
        return jnp.pad(v, (0, 128 - v.shape[0]))

    # Pack all eight small vectors into one (8, 128) tile (a single vreg).
    vecs = jnp.stack([
        pad128(p['ln1_g']), pad128(p['ln1_b']),
        pad128(p['ln2_g']), pad128(p['ln2_b']),
        pad128(p['out_proj_b']), pad128(p['c_proj_b']),
        pad128(bqkv), pad128(p['c_fc_b']),
    ])                                                     # (8, 128)

    return {
        'vecs': vecs,
        'wqkv': wqkv,                                      # (D, 3D)
        'wo': p['out_proj_w'].T,                           # (D, D)
        'wfc': p['c_fc_w'].T,                              # (D, 4D)
        'wpr': p['c_proj_w'].T,                            # (4D, D)
    }


# ------------------------------ pure-JAX reference ---------------------------
def reference(x, p):
    def ln(v, g, b):
        mu = jnp.mean(v, axis=-1, keepdims=True)
        var = jnp.mean((v - mu) ** 2, axis=-1, keepdims=True)
        return (v - mu) / jnp.sqrt(var + LN_EPS) * g + b

    h = ln(x, p['ln1_g'], p['ln1_b'])                      # (L, N, D)
    qkv = h @ p['in_proj_w'].T + p['in_proj_b']            # (L, N, 3D)
    q, k, v = jnp.split(qkv, 3, axis=-1)
    q = q.reshape(SEQ, BATCH, N_HEAD, HEAD_DIM) * (HEAD_DIM ** -0.5)
    k = k.reshape(SEQ, BATCH, N_HEAD, HEAD_DIM)
    v = v.reshape(SEQ, BATCH, N_HEAD, HEAD_DIM)
    s = jnp.einsum('lnhd,mnhd->nhlm', q, k)
    a = jax.nn.softmax(s, axis=-1)
    ctx = jnp.einsum('nhlm,mnhd->lnhd', a, v).reshape(SEQ, BATCH, D_MODEL)
    attn_out = ctx @ p['out_proj_w'].T + p['out_proj_b']
    x1 = x + attn_out
    h2 = ln(x1, p['ln2_g'], p['ln2_b'])
    fc = h2 @ p['c_fc_w'].T + p['c_fc_b']
    gelu = fc * jax.nn.sigmoid(1.702 * fc)
    mlp = gelu @ p['c_proj_w'].T + p['c_proj_b']
    return x1 + mlp


if __name__ == "__main__":
    key = jax.random.PRNGKey(0)
    kx, kp = jax.random.split(key)
    x = jax.random.normal(kx, (SEQ, BATCH, D_MODEL), jnp.float32)

    params = init_params(kp)
    kernel_params = prepare_kernel_params(params)

    out = residual_attention_block(x, kernel_params)
    out = jax.block_until_ready(out)

    ref = reference(x, params)
    assert out.shape == (SEQ, BATCH, D_MODEL)
    max_err = float(jnp.max(jnp.abs(out - ref)))
    assert jnp.allclose(out, ref, atol=2e-4, rtol=2e-4), max_err

    print("KERNEL_OK")
</pallas_src>

<mosaic_0001>
module attributes {stable_mosaic.version = 11 : i64} {
  func.func @_residual_block_kernel(%arg0: i32, %arg1: memref<8x2x32xf32, #tpu.memory_space<vmem>>, %arg2: memref<8x128xf32, #tpu.memory_space<vmem>>, %arg3: memref<32x96xf32, #tpu.memory_space<vmem>>, %arg4: memref<32x32xf32, #tpu.memory_space<vmem>>, %arg5: memref<32x128xf32, #tpu.memory_space<vmem>>, %arg6: memref<128x32xf32, #tpu.memory_space<vmem>>, %arg7: memref<8x2x32xf32, #tpu.memory_space<vmem>>) attributes {dimension_semantics = [#tpu.dimension_semantics<arbitrary>], iteration_bounds = array<i64: 1>, scalar_prefetch = 0 : i64, scratch_operands = 0 : i64, tpu.core_type = #tpu.core_type<tc>, window_params = [{pipeline_mode = #tpu.pipeline_mode<synchronous>, transform_indices = @transform_0, window_bounds = array<i64: 8, 2, 32>}, {pipeline_mode = #tpu.pipeline_mode<synchronous>, transform_indices = @transform_1, window_bounds = array<i64: 8, 128>}, {pipeline_mode = #tpu.pipeline_mode<synchronous>, transform_indices = @transform_2, window_bounds = array<i64: 32, 96>}, {pipeline_mode = #tpu.pipeline_mode<synchronous>, transform_indices = @transform_3, window_bounds = array<i64: 32, 32>}, {pipeline_mode = #tpu.pipeline_mode<synchronous>, transform_indices = @transform_4, window_bounds = array<i64: 32, 128>}, {pipeline_mode = #tpu.pipeline_mode<synchronous>, transform_indices = @transform_5, window_bounds = array<i64: 128, 32>}, {pipeline_mode = #tpu.pipeline_mode<synchronous>, transform_indices = @transform_6, window_bounds = array<i64: 8, 2, 32>}]} {
    %c0 = arith.constant 0 : index
    %c0_0 = arith.constant 0 : index
    %c0_1 = arith.constant 0 : index
    %0 = vector.load %arg1[%c0, %c0_0, %c0_1] : memref<8x2x32xf32, #tpu.memory_space<vmem>>, vector<8x2x32xf32>
    %1 = vector.shape_cast %0 : vector<8x2x32xf32> to vector<16x32xf32>
    %c0_2 = arith.constant 0 : index
    %c0_3 = arith.constant 0 : index
    %2 = vector.load %arg2[%c0_2, %c0_3] : memref<8x128xf32, #tpu.memory_space<vmem>>, vector<8x128xf32>
    %3 = vector.extract_strided_slice %2 {offsets = [0, 0], sizes = [1, 32], strides = [1, 1]} : vector<8x128xf32> to vector<1x32xf32>
    %4 = vector.extract_strided_slice %2 {offsets = [1, 0], sizes = [1, 32], strides = [1, 1]} : vector<8x128xf32> to vector<1x32xf32>
    %5 = vector.extract_strided_slice %2 {offsets = [2, 0], sizes = [1, 32], strides = [1, 1]} : vector<8x128xf32> to vector<1x32xf32>
    %6 = vector.extract_strided_slice %2 {offsets = [3, 0], sizes = [1, 32], strides = [1, 1]} : vector<8x128xf32> to vector<1x32xf32>
    %7 = vector.extract_strided_slice %2 {offsets = [4, 0], sizes = [1, 32], strides = [1, 1]} : vector<8x128xf32> to vector<1x32xf32>
    %8 = vector.extract_strided_slice %2 {offsets = [5, 0], sizes = [1, 32], strides = [1, 1]} : vector<8x128xf32> to vector<1x32xf32>
    %9 = vector.extract_strided_slice %2 {offsets = [6, 0], sizes = [1, 96], strides = [1, 1]} : vector<8x128xf32> to vector<1x96xf32>
    %10 = vector.extract_strided_slice %2 {offsets = [7, 0], sizes = [1, 128], strides = [1, 1]} : vector<8x128xf32> to vector<1x128xf32>
    %cst = arith.constant dense<0.000000e+00> : vector<16xf32>
    %11 = vector.multi_reduction <add>, %1, %cst [1] : vector<16x32xf32> to vector<16xf32>
    %12 = vector.shape_cast %11 : vector<16xf32> to vector<16x1xf32>
    %cst_4 = arith.constant 3.200000e+01 : f32
    %13 = vector.broadcast %cst_4 : f32 to vector<16x1xf32>
    %14 = arith.divf %12, %13 : vector<16x1xf32>
    %15 = vector.broadcast %14 : vector<16x1xf32> to vector<16x32xf32>
    %16 = arith.subf %1, %15 : vector<16x32xf32>
    %17 = arith.mulf %16, %16 : vector<16x32xf32>
    %cst_5 = arith.constant dense<0.000000e+00> : vector<16xf32>
    %18 = vector.multi_reduction <add>, %17, %cst_5 [1] : vector<16x32xf32> to vector<16xf32>
    %19 = vector.shape_cast %18 : vector<16xf32> to vector<16x1xf32>
    %cst_6 = arith.constant 3.200000e+01 : f32
    %20 = vector.broadcast %cst_6 : f32 to vector<16x1xf32>
    %21 = arith.divf %19, %20 : vector<16x1xf32>
    %22 = vector.broadcast %14 : vector<16x1xf32> to vector<16x32xf32>
    %23 = arith.subf %1, %22 : vector<16x32xf32>
    %cst_7 = arith.constant 9.99999974E-6 : f32
    %24 = vector.broadcast %cst_7 : f32 to vector<16x1xf32>
    %25 = arith.addf %21, %24 : vector<16x1xf32>
    %26 = math.rsqrt %25 : vector<16x1xf32>
    %27 = vector.broadcast %26 : vector<16x1xf32> to vector<16x32xf32>
    %28 = arith.mulf %23, %27 : vector<16x32xf32>
    %29 = vector.broadcast %3 : vector<1x32xf32> to vector<16x32xf32>
    %30 = arith.mulf %28, %29 : vector<16x32xf32>
    %31 = vector.broadcast %4 : vector<1x32xf32> to vector<16x32xf32>
    %32 = arith.addf %30, %31 : vector<16x32xf32>
    %c0_8 = arith.constant 0 : index
    %c0_9 = arith.constant 0 : index
    %33 = vector.load %arg3[%c0_8, %c0_9] : memref<32x96xf32, #tpu.memory_space<vmem>>, vector<32x96xf32>
    %cst_10 = arith.constant dense<0.000000e+00> : vector<16x96xf32>
    %34 = tpu.matmul %32, %33, %cst_10 {dimension_numbers = #tpu.dot_dimension_numbers<[1], [0], [0], [1], [0, 0, 1, 1], [], []>} : vector<16x32xf32>, vector<32x96xf32>, vector<16x96xf32> -> vector<16x96xf32>
    %35 = vector.broadcast %9 : vector<1x96xf32> to vector<16x96xf32>
    %36 = arith.addf %34, %35 : vector<16x96xf32>
    %37 = vector.extract_strided_slice %36 {offsets = [0, 0], sizes = [16, 32], strides = [1, 1]} : vector<16x96xf32> to vector<16x32xf32>
    %38 = vector.extract_strided_slice %36 {offsets = [0, 32], sizes = [16, 32], strides = [1, 1]} : vector<16x96xf32> to vector<16x32xf32>
    %39 = vector.extract_strided_slice %36 {offsets = [0, 64], sizes = [16, 32], strides = [1, 1]} : vector<16x96xf32> to vector<16x32xf32>
    %40 = vector.shape_cast %37 : vector<16x32xf32> to vector<8x2x4x8xf32>
    %41 = tpu.transpose %40, [1, 2, 0, 3] : vector<8x2x4x8xf32> -> vector<2x4x8x8xf32>
    %42 = vector.shape_cast %41 : vector<2x4x8x8xf32> to vector<8x8x8xf32>
    %43 = vector.shape_cast %38 : vector<16x32xf32> to vector<8x2x4x8xf32>
    %44 = tpu.transpose %43, [1, 2, 0, 3] : vector<8x2x4x8xf32> -> vector<2x4x8x8xf32>
    %45 = vector.shape_cast %44 : vector<2x4x8x8xf32> to vector<8x8x8xf32>
    %46 = vector.shape_cast %39 : vector<16x32xf32> to vector<8x2x4x8xf32>
    %47 = tpu.transpose %46, [1, 2, 0, 3] : vector<8x2x4x8xf32> -> vector<2x4x8x8xf32>
    %48 = vector.shape_cast %47 : vector<2x4x8x8xf32> to vector<8x8x8xf32>
    %cst_11 = arith.constant dense<0.000000e+00> : vector<8x8x8xf32>
    %49 = tpu.matmul %42, %45, %cst_11 {dimension_numbers = #tpu.dot_dimension_numbers<[2], [2], [1], [1], [0, 0, 0, 1, 1, 1], [0], [0]>} : vector<8x8x8xf32>, vector<8x8x8xf32>, vector<8x8x8xf32> -> vector<8x8x8xf32>
    %cst_12 = arith.constant dense<0xFF800000> : vector<8x8xf32>
    %50 = vector.multi_reduction <maximumf>, %49, %cst_12 [2] : vector<8x8x8xf32> to vector<8x8xf32>
    %51 = vector.shape_cast %50 : vector<8x8xf32> to vector<8x8x1xf32>
    %52 = vector.broadcast %51 : vector<8x8x1xf32> to vector<8x8x8xf32>
    %53 = arith.subf %49, %52 : vector<8x8x8xf32>
    %54 = math.exp %53 : vector<8x8x8xf32>
    %cst_13 = arith.constant dense<0.000000e+00> : vector<8x8xf32>
    %55 = vector.multi_reduction <add>, %54, %cst_13 [2] : vector<8x8x8xf32> to vector<8x8xf32>
    %56 = vector.shape_cast %55 : vector<8x8xf32> to vector<8x8x1xf32>
    %57 = tpu.reciprocal %56 {approx = true} : vector<8x8x1xf32> -> vector<8x8x1xf32>
    %58 = vector.broadcast %57 : vector<8x8x1xf32> to vector<8x8x8xf32>
    %59 = arith.mulf %54, %58 : vector<8x8x8xf32>
    %cst_14 = arith.constant dense<0.000000e+00> : vector<8x8x8xf32>
    %60 = tpu.matmul %59, %48, %cst_14 {dimension_numbers = #tpu.dot_dimension_numbers<[2], [1], [1], [2], [0, 0, 0, 1, 1, 2], [0], [0]>} : vector<8x8x8xf32>, vector<8x8x8xf32>, vector<8x8x8xf32> -> vector<8x8x8xf32>
    %61 = vector.shape_cast %60 : vector<8x8x8xf32> to vector<2x4x8x8xf32>
    %62 = tpu.transpose %61, [2, 0, 1, 3] : vector<2x4x8x8xf32> -> vector<8x2x4x8xf32>
    %63 = vector.shape_cast %62 : vector<8x2x4x8xf32> to vector<16x32xf32>
    %c0_15 = arith.constant 0 : index
    %c0_16 = arith.constant 0 : index
    %64 = vector.load %arg4[%c0_15, %c0_16] : memref<32x32xf32, #tpu.memory_space<vmem>>, vector<32x32xf32>
    %cst_17 = arith.constant dense<0.000000e+00> : vector<16x32xf32>
    %65 = tpu.matmul %63, %64, %cst_17 {dimension_numbers = #tpu.dot_dimension_numbers<[1], [0], [0], [1], [0, 0, 1, 1], [], []>} : vector<16x32xf32>, vector<32x32xf32>, vector<16x32xf32> -> vector<16x32xf32>
    %66 = vector.broadcast %7 : vector<1x32xf32> to vector<16x32xf32>
    %67 = arith.addf %65, %66 : vector<16x32xf32>
    %68 = arith.addf %1, %67 : vector<16x32xf32>
    %cst_18 = arith.constant dense<0.000000e+00> : vector<16xf32>
    %69 = vector.multi_reduction <add>, %68, %cst_18 [1] : vector<16x32xf32> to vector<16xf32>
    %70 = vector.shape_cast %69 : vector<16xf32> to vector<16x1xf32>
    %cst_19 = arith.constant 3.200000e+01 : f32
    %71 = vector.broadcast %cst_19 : f32 to vector<16x1xf32>
    %72 = arith.divf %70, %71 : vector<16x1xf32>
    %73 = vector.broadcast %72 : vector<16x1xf32> to vector<16x32xf32>
    %74 = arith.subf %68, %73 : vector<16x32xf32>
    %75 = arith.mulf %74, %74 : vector<16x32xf32>
    %cst_20 = arith.constant dense<0.000000e+00> : vector<16xf32>
    %76 = vector.multi_reduction <add>, %75, %cst_20 [1] : vector<16x32xf32> to vector<16xf32>
    %77 = vector.shape_cast %76 : vector<16xf32> to vector<16x1xf32>
    %cst_21 = arith.constant 3.200000e+01 : f32
    %78 = vector.broadcast %cst_21 : f32 to vector<16x1xf32>
    %79 = arith.divf %77, %78 : vector<16x1xf32>
    %80 = vector.broadcast %72 : vector<16x1xf32> to vector<16x32xf32>
    %81 = arith.subf %68, %80 : vector<16x32xf32>
    %cst_22 = arith.constant 9.99999974E-6 : f32
    %82 = vector.broadcast %cst_22 : f32 to vector<16x1xf32>
    %83 = arith.addf %79, %82 : vector<16x1xf32>
    %84 = math.rsqrt %83 : vector<16x1xf32>
    %85 = vector.broadcast %84 : vector<16x1xf32> to vector<16x32xf32>
    %86 = arith.mulf %81, %85 : vector<16x32xf32>
    %87 = vector.broadcast %5 : vector<1x32xf32> to vector<16x32xf32>
    %88 = arith.mulf %86, %87 : vector<16x32xf32>
    %89 = vector.broadcast %6 : vector<1x32xf32> to vector<16x32xf32>
    %90 = arith.addf %88, %89 : vector<16x32xf32>
    %c0_23 = arith.constant 0 : index
    %c0_24 = arith.constant 0 : index
    %91 = vector.load %arg5[%c0_23, %c0_24] : memref<32x128xf32, #tpu.memory_space<vmem>>, vector<32x128xf32>
    %cst_25 = arith.constant dense<0.000000e+00> : vector<16x128xf32>
    %92 = tpu.matmul %90, %91, %cst_25 {dimension_numbers = #tpu.dot_dimension_numbers<[1], [0], [0], [1], [0, 0, 1, 1], [], []>} : vector<16x32xf32>, vector<32x128xf32>, vector<16x128xf32> -> vector<16x128xf32>
    %93 = vector.broadcast %10 : vector<1x128xf32> to vector<16x128xf32>
    %94 = arith.addf %92, %93 : vector<16x128xf32>
    %cst_26 = arith.constant 1.702000e+00 : f32
    %95 = vector.broadcast %cst_26 : f32 to vector<16x128xf32>
    %96 = arith.mulf %95, %94 : vector<16x128xf32>
    %97 = arith.negf %96 : vector<16x128xf32>
    %98 = math.exp %97 : vector<16x128xf32>
    %cst_27 = arith.constant 1.000000e+00 : f32
    %99 = vector.broadcast %cst_27 : f32 to vector<16x128xf32>
    %100 = arith.addf %99, %98 : vector<16x128xf32>
    %101 = arith.divf %99, %100 : vector<16x128xf32>
    %102 = arith.mulf %94, %101 : vector<16x128xf32>
    %c0_28 = arith.constant 0 : index
    %c0_29 = arith.constant 0 : index
    %103 = vector.load %arg6[%c0_28, %c0_29] : memref<128x32xf32, #tpu.memory_space<vmem>>, vector<128x32xf32>
    %cst_30 = arith.constant dense<0.000000e+00> : vector<16x32xf32>
    %104 = tpu.matmul %102, %103, %cst_30 {dimension_numbers = #tpu.dot_dimension_numbers<[1], [0], [0], [1], [0, 0, 1, 1], [], []>} : vector<16x128xf32>, vector<128x32xf32>, vector<16x32xf32> -> vector<16x32xf32>
    %105 = vector.broadcast %8 : vector<1x32xf32> to vector<16x32xf32>
    %106 = arith.addf %104, %105 : vector<16x32xf32>
    %107 = arith.addf %68, %106 : vector<16x32xf32>
    %108 = vector.shape_cast %107 : vector<16x32xf32> to vector<8x2x32xf32>
    %c0_31 = arith.constant 0 : index
    %c0_32 = arith.constant 0 : index
    %c0_33 = arith.constant 0 : index
    %109 = vector.load %arg7[%c0_31, %c0_32, %c0_33] : memref<8x2x32xf32, #tpu.memory_space<vmem>>, vector<8x2x32xf32>
    tpu.vector_store %arg7[%c0_31, %c0_32, %c0_33], %108 {strides = array<i32>} : memref<8x2x32xf32, #tpu.memory_space<vmem>>, vector<8x2x32xf32>,
    return
  }
  func.func @transform_0(%arg0: i32) -> (i32, i32, i32) {
    %c0_i32 = arith.constant 0 : i32
    %c0_i32_0 = arith.constant 0 : i32
    %c0_i32_1 = arith.constant 0 : i32
    %c0_i32_2 = arith.constant 0 : i32
    return %c0_i32, %c0_i32_0, %c0_i32_1 : i32, i32, i32
  }
  func.func @transform_1(%arg0: i32) -> (i32, i32) {
    %c0_i32 = arith.constant 0 : i32
    %c0_i32_0 = arith.constant 0 : i32
    %c0_i32_1 = arith.constant 0 : i32
    return %c0_i32, %c0_i32_0 : i32, i32
  }
  func.func @transform_2(%arg0: i32) -> (i32, i32) {
    %c0_i32 = arith.constant 0 : i32
    %c0_i32_0 = arith.constant 0 : i32
    %c0_i32_1 = arith.constant 0 : i32
    return %c0_i32, %c0_i32_0 : i32, i32
  }
  func.func @transform_3(%arg0: i32) -> (i32, i32) {
    %c0_i32 = arith.constant 0 : i32
    %c0_i32_0 = arith.constant 0 : i32
    %c0_i32_1 = arith.constant 0 : i32
    return %c0_i32, %c0_i32_0 : i32, i32
  }
  func.func @transform_4(%arg0: i32) -> (i32, i32) {
    %c0_i32 = arith.constant 0 : i32
    %c0_i32_0 = arith.constant 0 : i32
    %c0_i32_1 = arith.constant 0 : i32
    return %c0_i32, %c0_i32_0 : i32, i32
  }
  func.func @transform_5(%arg0: i32) -> (i32, i32) {
    %c0_i32 = arith.constant 0 : i32
    %c0_i32_0 = arith.constant 0 : i32
    %c0_i32_1 = arith.constant 0 : i32
    return %c0_i32, %c0_i32_0 : i32, i32
  }
  func.func @transform_6(%arg0: i32) -> (i32, i32, i32) {
    %c0_i32 = arith.constant 0 : i32
    %c0_i32_0 = arith.constant 0 : i32
    %c0_i32_1 = arith.constant 0 : i32
    %c0_i32_2 = arith.constant 0 : i32
    return %c0_i32, %c0_i32_0, %c0_i32_1 : i32, i32, i32
  }
}

</mosaic_0001>

<bundles_post_ra>
// kernel: tpu_custom_call.1
= control target key start
LH: loop header
LB: loop body
LE: loop exit
PB: predicated region body
PF: predicated region fallthrough
CT: control target
= control target key end

     0   :  { %v46_v2 = vlaneseq  ;;  %v4113_v5 = vmov 1983009808   ;;  %s4890_s0 = inlined_call_operand.vmem [shape: f32[8,2,32], index: 0, kind: input, shape index: {}]   ;;  %s4891_s1 = inlined_call_operand.vmem [shape: f32[8,128], index: 1, kind: input, shape index: {}]   ;;  %s4892_s2 = inlined_call_operand.vmem [shape: f32[32,96], index: 2, kind: input, shape index: {}]   ;;  %s4893_s3 = inlined_call_operand.vmem [shape: f32[32,32], index: 3, kind: input, shape index: {}]   ;;  %s4894_s4 = inlined_call_operand.vmem [shape: f32[32,128], index: 4, kind: input, shape index: {}]   ;;  %s4895_s5 = inlined_call_operand.vmem [shape: f32[128,32], index: 5, kind: input, shape index: {}]   ;;  %s4896_s6 = inlined_call_operand.hbm [shape: f32[8,2,32], index: 6, kind: output, shape index: {}]  }
   0x1   :  { %v24_v0 = vld [vmem:[%s4890_s0] sm:$0x3]  ;;  %v25_v1 = vld [vmem:[%s4890_s0 + $0x2] sm:$0x3]  ;;  %v26_v3 = vld [vmem:[%s4890_s0 + $0x4] sm:$0x3]  ;;  %v44_v6 = vunpack.c.l.s4 %v4113_v5 }
   0x2   :  { %v27_v4 = vld [vmem:[%s4890_s0 + $0x6] sm:$0x3]  ;;  %v4179_v7 = vshrl.u32 %v46_v2, 7  ;;  %v28_v8 = vld [vmem:[%s4890_s0 + $0x8] sm:$0x3]  ;;  %v41_v10 = vcombine.low %v24_v0, %v25_v1 }
   0x3   :  { %v29_v9 = vld [vmem:[%s4890_s0 + $0xa] sm:$0x3]  ;;  %v30_v11 = vld [vmem:[%s4890_s0 + $0xc] sm:$0x3]  ;;  %v31_v12 = vld [vmem:[%s4890_s0 + $0xe] sm:$0x3]  ;;  %v42_v13 = vcombine.low %v26_v3, %v27_v4  ;;  %v45_v14 = vunpack.c.0.s8 %v44_v6 }
   0x4   :  { %v58_v15 = vcombine.low %v28_v8, %v29_v9  ;;  %v59_v16 = vcombine.low %v30_v11, %v31_v12 }
   0x5   :  { %11 = vsyncpa [#allocation3], 0  ;;  %v4194_v17 = vsub.s32 %v45_v14, %v4179_v7  ;;  %vm77_vm0 = vcmask 261120   ;;  %v4114_v26 = vmov 269488144   ;;  %s4119_s23 = smov 112  }
   0x6   :  { %v90_v27 = vunpack.c.l.s4 %v4114_v26  ;;  %v4115_v28 = vmov 842150450   ;;  %v4116_v30 = vmov 1414812756   ;;  %v4117_v32 = vmov 1987475062  }
   0x7   :  { %v49_v18 = vrot.slane %v41_v10, %v4194_v17  ;;  %v56_v19 = vrot.slane %v42_v13, %v4194_v17  ;;  %v66_v20 = vrot.slane %v58_v15, %v4194_v17  ;;  %v73_v21 = vrot.slane %v59_v16, %v4194_v17  ;;  %s4120_s24 = smov 104   ;;  %s4121_s25 = smov 96  }
   0x8   :  { %v97_v29 = vunpack.c.l.s4 %v4115_v28  ;;  %v104_v31 = vunpack.c.l.s4 %v4116_v30  ;;  %v111_v33 = vunpack.c.l.s4 %v4117_v32  ;;  %v91_v34 = vunpack.c.0.s8 %v90_v27  ;;  %v4276_v30 = vld [vmem:[%s4891_s1] sm:$0xff]  ;;  %s4125_s26 = smov 64   ;;  %s4127_s11 = smov 16  }
   0x9   :  { %v57_v22 = vcombine.low %v49_v18, %v56_v19  ;;  %v74_v23 = vcombine.low %v66_v20, %v73_v21  ;;  %v370_v20 = vld [vmem:[%s4892_s2 + $0x18] sm:$0xff]  ;;  %v369_v21 = vld [vmem:[%s4892_s2 + $0x10] sm:$0xff]  ;;  %v301_v28 = vsub.s32 0, %v4179_v7  ;;  %vm4123_vm1 = vmmov 0   ;;  %s4128_s12 = smov 24  }
   0xa   :  { %v98_v35 = vunpack.c.0.s8 %v97_v29  ;;  %v105_v36 = vunpack.c.0.s8 %v104_v31  ;;  %v112_v37 = vunpack.c.0.s8 %v111_v33  ;;  %v4203_v38 = vsub.s32 %v91_v34, %v4179_v7  ;;  %3867 = vmatprep.subr.mxu1 %v370_v20 }
   0xb   :  { %v78_v24 = vsel %vm77_vm0, %v57_v22, 0.0  ;;  %v81_v25 = vsel %vm77_vm0, %v74_v23, 0.0  ;;  %3868 = vmatpush3.msra.mxu1 %v370_v20  ;;  %v368_v22 = vld [vmem:[%s4892_s2 + $0x8] sm:$0xff]  ;;  %v367_v23 = vld [vmem:[%s4892_s2] sm:$0xff]  ;;  %v335_v31 = vsub.s32 1, %v4179_v7  ;;  %v302_v33 = vrot.slane %v4276_v30, %v301_v28  ;;  %s4118_s2 = smov 120  }
   0xc   :  { %79 = vadd.xlane.f32.xlu0 %v78_v24  ;;  %v4206_v39 = vsub.s32 %v98_v35, %v4179_v7  ;;  %v4209_v40 = vsub.s32 %v105_v36, %v4179_v7  ;;  %v4212_v41 = vsub.s32 %v112_v37, %v4179_v7  ;;  %3869 = vmatprep.subr.mxu1 %v369_v21  ;;  %vm1380_vm2 = vcmask 64512  }
   0xd   :  { %3870 = vmatpush3.msra.mxu1 %v369_v21  ;;  %v336_v34 = vrot.slane %v4276_v30, %v335_v31  ;;  %v304_v35 = vcombine.high %v302_v33, %v302_v33  ;;  %v311_v36 = vrot.slane %v302_v33, %v4194_v17  ;;  %vm2959_vm3 = vcmask 130048  }
   0xe   :  { %3871 = vmatprep.subr.mxu1 %v368_v22  ;;  %vm2962_vm4 = vcmask 195584   ;;  %vm3730_vm5 = vcmask 254976  }
   0xf   :  { %3872 = vmatpush3.msra.mxu1 %v368_v22  ;;  %v338_v37 = vcombine.high %v336_v34, %v336_v34 }
  0x10   :  { %82 = vadd.xlane.f32.xlu0 %v81_v25  ;;  %3873 = vmatprep.subr.mxu1 %v367_v23 }
  0x11   :  { %3874 = vmatpush3.msra.mxu1 %v367_v23 }
  0x95   :  { %v80_v42 = vpop.xlane.xlu0 %79 }
  0x96   :  { %v85_v43 = vmul.f32 0.03125, %v80_v42  ;;  %v318_v42 = vrot.slane %v304_v35, %v4194_v17 }
  0x98   :  { %v95_v44 = vrot.slane %v85_v43, %v4203_v38  ;;  %v102_v45 = vrot.slane %v85_v43, %v4206_v39  ;;  %v109_v46 = vrot.slane %v85_v43, %v4209_v40  ;;  %v116_v47 = vrot.slane %v85_v43, %v4212_v41 }
  0x99   :  { %v83_v48 = vpop.xlane.xlu0 %82  ;;  %v345_v43 = vrot.slane %v336_v34, %v4194_v17 }
  0x9a   :  { %v86_v49 = vmul.f32 0.03125, %v83_v48  ;;  %v4218_v50 = vsub.f32 %v24_v0, %v95_v44  ;;  %v4220_v51 = vsub.f32 %v25_v1, %v102_v45  ;;  %v4222_v52 = vsub.f32 %v26_v3, %v109_v46 }
  0x9b   :  { %v4224_v53 = vsub.f32 %v27_v4, %v116_v47  ;;  %v319_v45 = vcombine.high %v311_v36, %v311_v36  ;;  %v352_v46 = vrot.slane %v338_v37, %v4194_v17 }
  0x9c   :  { %v123_v54 = vrot.slane %v86_v49, %v4203_v38  ;;  %v130_v55 = vrot.slane %v86_v49, %v4206_v39  ;;  %v137_v56 = vrot.slane %v86_v49, %v4209_v40  ;;  %v144_v57 = vrot.slane %v86_v49, %v4212_v41 }
  0x9d   :  { %v161_v58 = vmul.f32 %v4218_v50, %v4218_v50  ;;  %v162_v59 = vmul.f32 %v4220_v51, %v4220_v51  ;;  %v163_v60 = vmul.f32 %v4222_v52, %v4222_v52  ;;  %v164_v61 = vmul.f32 %v4224_v53, %v4224_v53 }
  0x9e   :  { %v4238_v62 = vsub.f32 %v28_v8, %v123_v54  ;;  %v4240_v63 = vsub.f32 %v29_v9, %v130_v55  ;;  %v4242_v0 = vsub.f32 %v30_v11, %v137_v56  ;;  %v4244_v1 = vsub.f32 %v31_v12, %v144_v57 }
  0x9f   :  { %v177_v2 = vcombine.low %v161_v58, %v162_v59  ;;  %v178_v3 = vcombine.low %v163_v60, %v164_v61  ;;  %v320_v55 = vcombine.high %v318_v42, %v318_v42  ;;  %v353_v56 = vcombine.high %v345_v43, %v345_v43 }
  0xa0   :  { %v165_v4 = vmul.f32 %v4238_v62, %v4238_v62  ;;  %v166_v5 = vmul.f32 %v4240_v63, %v4240_v63  ;;  %v167_v6 = vmul.f32 %v4242_v0, %v4242_v0  ;;  %v168_v8 = vmul.f32 %v4244_v1, %v4244_v1 }
  0xa1   :  { %v185_v9 = vrot.slane %v177_v2, %v4194_v17  ;;  %v192_v10 = vrot.slane %v178_v3, %v4194_v17  ;;  %v354_v2 = vcombine.high %v352_v46, %v352_v46 }
  0xa2   :  { %v194_v11 = vcombine.low %v165_v4, %v166_v5  ;;  %v195_v12 = vcombine.low %v167_v6, %v168_v8 }
  0xa3   :  { %v193_v13 = vcombine.low %v185_v9, %v192_v10 }
  0xa4   :  { %v202_v14 = vrot.slane %v194_v11, %v4194_v17  ;;  %v209_v15 = vrot.slane %v195_v12, %v4194_v17 }
  0xa5   :  { %v213_v16 = vsel %vm77_vm0, %v193_v13, 0.0 }
  0xa6   :  { %214 = vadd.xlane.f32.xlu1 %v213_v16  ;;  %v210_v18 = vcombine.low %v202_v14, %v209_v15 }
  0xa8   :  { %v216_v19 = vsel %vm77_vm0, %v210_v18, 0.0 }
  0xaa   :  { %217 = vadd.xlane.f32.xlu1 %v216_v19 }
 0x12f   :  { %v215_v24 = vpop.xlane.xlu1 %214 }
 0x130   :  { %v219_v25 = vmul.f32 0.03125, %v215_v24 }
 0x132   :  { %v221_v26 = vadd.f32 1e-05, %v219_v25 }
 0x133   :  { %v218_v27 = vpop.xlane.xlu1 %217 }
 0x134   :  { %4034 = vrsqrt.f32 %v221_v26  ;;  %v220_v29 = vmul.f32 0.03125, %v218_v27 }
 0x136   :  { %v222_v32 = vadd.f32 1e-05, %v220_v29 }
 0x138   :  { %4036 = vrsqrt.f32 %v222_v32  ;;  %v373_v32 = vsub.s32 6, %v4179_v7 }
 0x13a   :  { %v374_v33 = vrot.slane %v4276_v30, %v373_v32 }
 0x141   :  { %v4035_v44 = vpop.eup %4034 }
 0x142   :  { %v233_v47 = vrot.slane %v4035_v44, %v4203_v38  ;;  %v240_v48 = vrot.slane %v4035_v44, %v4206_v39  ;;  %v247_v49 = vrot.slane %v4035_v44, %v4209_v40  ;;  %v254_v54 = vrot.slane %v4035_v44, %v4212_v41 }
 0x144   :  { %v291_v57 = vmul.f32 %v233_v47, %v4218_v50  ;;  %v292_v58 = vmul.f32 %v240_v48, %v4220_v51  ;;  %v293_v59 = vmul.f32 %v247_v49, %v4222_v52  ;;  %v294_v60 = vmul.f32 %v254_v54, %v4224_v53 }
 0x145   :  { %v4037_v61 = vpop.eup %4036  ;;  %v4122_v47 = vmov 0.0   ;;  %v4124_v48 = vmov 1934713408  }
 0x146   :  { %v268_v3 = vrot.slane %v4037_v61, %v4206_v39  ;;  %v282_v4 = vrot.slane %v4037_v61, %v4212_v41  ;;  %v325_v5 = vmul.f32 %v311_v36, %v291_v57  ;;  %v326_v6 = vmul.f32 %v319_v45, %v292_v58  ;;  %3878 = vmatprep.subr.mxu1 %v4122_v47 }
 0x147   :  { %v327_v8 = vmul.f32 %v318_v42, %v293_v59  ;;  %v328_v9 = vmul.f32 %v320_v55, %v294_v60  ;;  %v261_v10 = vrot.slane %v4037_v61, %v4203_v38  ;;  %v275_v50 = vrot.slane %v4037_v61, %v4209_v40  ;;  %3888 = vmatprep.subr.mxu0 %v4122_v47 }
 0x148   :  { %v296_v51 = vmul.f32 %v268_v3, %v4240_v63  ;;  %v298_v52 = vmul.f32 %v282_v4, %v4244_v1  ;;  %v359_v11 = vadd.f32 %v345_v43, %v325_v5  ;;  %v360_v53 = vadd.f32 %v353_v56, %v326_v6  ;;  %3890 = vmatprep.mubr.msk.f32.mxu0 %vm4123_vm1, %v4122_v47 }
 0x149   :  { %v361_v12 = vadd.f32 %v352_v46, %v327_v8  ;;  %v362_v13 = vadd.f32 %v354_v2, %v328_v9  ;;  %v295_v14 = vmul.f32 %v261_v10, %v4238_v62  ;;  %v297_v15 = vmul.f32 %v275_v50, %v4242_v0 }
 0x14a   :  { %v330_v16 = vmul.f32 %v319_v45, %v296_v51  ;;  %v332_v18 = vmul.f32 %v320_v55, %v298_v52  ;;  %v383_v19 = vcombine.low %v359_v11, %v360_v53  ;;  %v551_v49 = vunpack.c.l.s4 %v4124_v48 }
 0x14b   :  { %v384_v20 = vcombine.low %v361_v12, %v362_v13  ;;  %v329_v21 = vmul.f32 %v311_v36, %v295_v14  ;;  %v331_v22 = vmul.f32 %v318_v42, %v297_v15 }
 0x14c   :  { %v364_v23 = vadd.f32 %v353_v56, %v330_v16  ;;  %v366_v24 = vadd.f32 %v354_v2, %v332_v18  ;;  %v391_v63 = vrot.slane %v383_v19, %v4194_v17  ;;  %v552_v2 = vunpack.c.0.s8 %v551_v49 }
 0x14d   :  { %v398_v1 = vrot.slane %v384_v20, %v4194_v17  ;;  %v363_v25 = vadd.f32 %v345_v43, %v329_v21  ;;  %v365_v26 = vadd.f32 %v352_v46, %v331_v22 }
 0x14e   :  { %v4370_v51 = vsub.s32 %v552_v2, %v4179_v7 }
 0x14f   :  { %v399_v27 = vcombine.low %v391_v63, %v398_v1  ;;  %v400_v28 = vcombine.low %v363_v25, %v364_v23  ;;  %v401_v29 = vcombine.low %v365_v26, %v366_v24 }
 0x151   :  { %3875 = vmatprep.mubr.msk.f32.mxu1 %vm77_vm0, %v399_v27  ;;  %v408_v62 = vrot.slane %v400_v28, %v4194_v17  ;;  %v415_v0 = vrot.slane %v401_v29, %v4194_v17 }
 0x153   :  { %v416_v31 = vcombine.low %v408_v62, %v415_v0 }
 0x155   :  { %3876 = vmatmul.mubr.msk.f32.vlgmr.msra.gmra.mxu1 %vm77_vm0, %v416_v31 }
 0x156   :  { %3880 = vmatprep.mubr.msk.f32.mxu1 %vm4123_vm1, %v4122_v47 }
 0x215   :  { %v3877_v34 = vpop.f32.mrf.mxu1 }
 0x216   :  { %v4309_v35 = vadd.f32 %v3877_v34, %v374_v33 }
 0x217   :  { %v487_v36 = vpop.f32.mrf.mxu1 }
 0x218   :  { %v4311_v37 = vadd.f32 %v487_v36, %v374_v33  ;;  %500 = vrot.lane.b32.xlu1 %v4309_v35, %s4118_s2 }
 0x21a   :  { %498 = vrot.lane.b32.xlu0 %v4311_v37, %s4118_s2 }
 0x21c   :  { %506 = vrot.lane.b32.xlu1 %v4309_v35, %s4119_s23 }
 0x21e   :  { %510 = vrot.lane.b32.xlu0 %v4311_v37, %s4120_s24 }
 0x220   :  { %504 = vrot.lane.b32.xlu1 %v4311_v37, %s4119_s23 }
 0x222   :  { %788 = vrot.lane.b32.xlu0 %v4311_v37, %s4121_s25 }
 0x224   :  { %512 = vrot.lane.b32.xlu1 %v4309_v35, %s4120_s24 }
 0x228   :  { %790 = vrot.lane.b32.xlu1 %v4309_v35, %s4121_s25 }
 0x28a   :  { %v4321_v30 = vpop.permute.xlu1 %500 }
 0x28b   :  { %794 = vrot.lane.b32.xlu1 %v4321_v30, %s4121_s25 }
 0x28c   :  { %v4324_v42 = vpop.permute.xlu0 %498 }
 0x28d   :  { %792 = vrot.lane.b32.xlu0 %v4324_v42, %s4121_s25 }
 0x28e   :  { %v4327_v43 = vpop.permute.xlu1 %506 }
 0x28f   :  { %798 = vrot.lane.b32.xlu1 %v4327_v43, %s4121_s25  ;;  %v584_v60 = vcombine.low %v4309_v35, %v4327_v43  ;;  %v585_v61 = vcombine.high %v4309_v35, %v4327_v43 }
 0x290   :  { %v4335_v46 = vpop.permute.xlu0 %510 }
 0x291   :  { %v532_v56 = vcombine.low %v4324_v42, %v4335_v46  ;;  %v533_v57 = vcombine.high %v4324_v42, %v4335_v46  ;;  %v592_v10 = vrot.slane %v584_v60, %v4194_v17  ;;  %v599_v50 = vrot.slane %v585_v61, %v4194_v17 }
 0x292   :  { %v4330_v44 = vpop.permute.xlu1 %504 }
 0x293   :  { %796 = vrot.lane.b32.xlu0 %v4330_v44, %s4121_s25  ;;  %v516_v54 = vcombine.low %v4311_v37, %v4330_v44  ;;  %v517_v55 = vcombine.high %v4311_v37, %v4330_v44  ;;  %v540_v5 = vrot.slane %v532_v56, %v4194_v17  ;;  %v547_v6 = vrot.slane %v533_v57, %v4194_v17 }
 0x294   :  { %v789_v14 = vpop.permute.xlu0 %788 }
 0x295   :  { %v524_v3 = vrot.slane %v516_v54, %v4194_v17  ;;  %v531_v4 = vrot.slane %v517_v55, %v4194_v17 }
 0x296   :  { %v4333_v45 = vpop.permute.xlu1 %512 }
 0x297   :  { %802 = vrot.lane.b32.xlu1 %v4333_v45, %s4121_s25  ;;  %800 = vrot.lane.b32.xlu0 %v4335_v46, %s4121_s25  ;;  %v600_v58 = vcombine.low %v4321_v30, %v4333_v45  ;;  %v601_v59 = vcombine.high %v4321_v30, %v4333_v45  ;;  %v548_v11 = vcombine.low %v524_v3, %v540_v5 }
 0x298   :  { %v549_v53 = vcombine.high %v524_v3, %v540_v5  ;;  %v564_v12 = vcombine.low %v531_v4, %v547_v6  ;;  %v565_v13 = vcombine.high %v531_v4, %v547_v6 }
 0x299   :  { %v608_v8 = vrot.slane %v600_v58, %v4194_v17  ;;  %v615_v9 = vrot.slane %v601_v59, %v4194_v17  ;;  %v556_v21 = vrot.slane %v548_v11, %v4370_v51 }
 0x29a   :  { %v791_v52 = vpop.permute.xlu1 %790  ;;  %v563_v22 = vrot.slane %v549_v53, %v4370_v51  ;;  %v572_v23 = vrot.slane %v564_v12, %v4370_v51  ;;  %v579_v24 = vrot.slane %v565_v13, %v4370_v51 }
 0x29b   :  { %v616_v15 = vcombine.low %v592_v10, %v608_v8  ;;  %v617_v16 = vcombine.high %v592_v10, %v608_v8  ;;  %v632_v18 = vcombine.low %v599_v50, %v615_v9  ;;  %v633_v19 = vcombine.high %v599_v50, %v615_v9 }
 0x29c   :  { %v652_v28 = vcombine.low %v556_v21, %v572_v23  ;;  %v660_v29 = vcombine.low %v563_v22, %v579_v24  ;;  %v3757_v62 = vcombine.high %v556_v21, %v572_v23  ;;  %v3758_v0 = vcombine.high %v563_v22, %v579_v24 }
 0x29d   :  { %v624_v1 = vrot.slane %v616_v15, %v4370_v51  ;;  %v631_v25 = vrot.slane %v617_v16, %v4370_v51  ;;  %v640_v26 = vrot.slane %v632_v18, %v4370_v51  ;;  %v647_v27 = vrot.slane %v633_v19, %v4370_v51 }
 0x29e   :  { %v4381_v49 = vrot.slane %v652_v28, %v4194_v17  ;;  %v4384_v54 = vrot.slane %v660_v29, %v4194_v17  ;;  %v4387_v57 = vrot.slane %v3757_v62, %v4194_v17  ;;  %v4390_v58 = vrot.slane %v3758_v0, %v4194_v17 }
 0x29f   :  { %v668_v33 = vcombine.low %v624_v1, %v640_v26  ;;  %v676_v34 = vcombine.low %v631_v25, %v647_v27  ;;  %v3759_v36 = vcombine.high %v624_v1, %v640_v26  ;;  %v3760_v48 = vcombine.high %v631_v25, %v647_v27 }
 0x2a1   :  { %v4393_v2 = vrot.slane %v668_v33, %v4194_v17  ;;  %v4396_v3 = vrot.slane %v676_v34, %v4194_v17  ;;  %v4399_v8 = vrot.slane %v3759_v36, %v4194_v17  ;;  %v4402_v9 = vrot.slane %v3760_v48, %v4194_v17 }
 0x2fd   :  { %v795_v20 = vpop.permute.xlu1 %794 }
 0x2ff   :  { %v793_v63 = vpop.permute.xlu0 %792 }
 0x301   :  { %v799_v31 = vpop.permute.xlu1 %798 }
 0x302   :  { %v880_v55 = vcombine.low %v791_v52, %v799_v31  ;;  %v881_v56 = vcombine.high %v791_v52, %v799_v31 }
 0x304   :  { %v888_v52 = vrot.slane %v880_v55, %v4194_v17  ;;  %v895_v11 = vrot.slane %v881_v56, %v4194_v17 }
 0x305   :  { %v797_v32 = vpop.permute.xlu0 %796 }
 0x306   :  { %v812_v59 = vcombine.low %v789_v14, %v797_v32  ;;  %v813_v60 = vcombine.high %v789_v14, %v797_v32 }
 0x308   :  { %v820_v13 = vrot.slane %v812_v59, %v4194_v17  ;;  %v827_v14 = vrot.slane %v813_v60, %v4194_v17 }
 0x309   :  { %v803_v61 = vpop.permute.xlu1 %802  ;;  %v801_v6 = vpop.permute.xlu0 %800 }
 0x30a   :  { %v896_v4 = vcombine.low %v795_v20, %v803_v61  ;;  %v897_v5 = vcombine.high %v795_v20, %v803_v61  ;;  %v828_v10 = vcombine.low %v793_v63, %v801_v6  ;;  %v829_v50 = vcombine.high %v793_v63, %v801_v6 }
 0x30c   :  { %v904_v53 = vrot.slane %v896_v4, %v4194_v17  ;;  %v911_v12 = vrot.slane %v897_v5, %v4194_v17  ;;  %v836_v15 = vrot.slane %v828_v10, %v4194_v17  ;;  %v843_v16 = vrot.slane %v829_v50, %v4194_v17 }
 0x30e   :  { %v912_v18 = vcombine.low %v888_v52, %v904_v53  ;;  %v913_v19 = vcombine.high %v888_v52, %v904_v53  ;;  %v928_v20 = vcombine.low %v895_v11, %v911_v12  ;;  %v929_v21 = vcombine.high %v895_v11, %v911_v12 }
 0x30f   :  { %v844_v22 = vcombine.low %v820_v13, %v836_v15  ;;  %v845_v23 = vcombine.high %v820_v13, %v836_v15  ;;  %v860_v24 = vcombine.low %v827_v14, %v843_v16  ;;  %v861_v63 = vcombine.high %v827_v14, %v843_v16 }
 0x310   :  { %v920_v1 = vrot.slane %v912_v18, %v4370_v51  ;;  %v927_v25 = vrot.slane %v913_v19, %v4370_v51  ;;  %v936_v26 = vrot.slane %v928_v20, %v4370_v51  ;;  %v943_v27 = vrot.slane %v929_v21, %v4370_v51 }
 0x311   :  { %v852_v28 = vrot.slane %v844_v22, %v4370_v51  ;;  %v859_v29 = vrot.slane %v845_v23, %v4370_v51  ;;  %v868_v62 = vrot.slane %v860_v24, %v4370_v51  ;;  %v875_v0 = vrot.slane %v861_v63, %v4370_v51 }
 0x312   :  { %v964_v31 = vcombine.low %v920_v1, %v936_v26  ;;  %v972_v32 = vcombine.low %v927_v25, %v943_v27  ;;  %v3763_v33 = vcombine.high %v920_v1, %v936_v26  ;;  %v3764_v34 = vcombine.high %v927_v25, %v943_v27 }
 0x313   :  { %v948_v36 = vcombine.low %v852_v28, %v868_v62  ;;  %v956_v48 = vcombine.low %v859_v29, %v875_v0  ;;  %v3761_v55 = vcombine.high %v852_v28, %v868_v62  ;;  %v3762_v56 = vcombine.high %v859_v29, %v875_v0 }
 0x314   :  { %v971_v59 = vrot.slane %v964_v31, %v4194_v17  ;;  %v979_v60 = vrot.slane %v972_v32, %v4194_v17  ;;  %v1039_v61 = vrot.slane %v3763_v33, %v4194_v17  ;;  %v1047_v4 = vrot.slane %v3764_v34, %v4194_v17 }
 0x315   :  { %v955_v5 = vrot.slane %v948_v36, %v4194_v17  ;;  %v963_v6 = vrot.slane %v956_v48, %v4194_v17  ;;  %v1023_v10 = vrot.slane %v3761_v55, %v4194_v17  ;;  %v1031_v50 = vrot.slane %v3762_v56, %v4194_v17 }
 0x316   :  { %v996_v52 = vcombine.low %v971_v59, %v979_v60  ;;  %v997_v11 = vcombine.high %v971_v59, %v979_v60  ;;  %v700_v53 = vcombine.low %v4393_v2, %v4396_v3  ;;  %v701_v12 = vcombine.high %v4393_v2, %v4396_v3 }
 0x317   :  { %v1064_v13 = vcombine.low %v1039_v61, %v1047_v4  ;;  %v980_v14 = vcombine.low %v955_v5, %v963_v6  ;;  %v1048_v15 = vcombine.low %v1023_v10, %v1031_v50  ;;  %v981_v16 = vcombine.high %v955_v5, %v963_v6 }
 0x318   :  { %v1004_v18 = vrot.slane %v996_v52, %v4370_v51  ;;  %v1011_v19 = vrot.slane %v997_v11, %v4370_v51  ;;  %v684_v20 = vcombine.low %v4381_v49, %v4384_v54  ;;  %v685_v21 = vcombine.high %v4381_v49, %v4384_v54 }
 0x319   :  { %v988_v22 = vrot.slane %v980_v14, %v4370_v51  ;;  %v995_v23 = vrot.slane %v981_v16, %v4370_v51  ;;  %v768_v2 = vcombine.low %v4399_v8, %v4402_v9  ;;  %v1065_v3 = vcombine.high %v1039_v61, %v1047_v4 }
 0x31a   :  { %v1049_v24 = vcombine.high %v1023_v10, %v1031_v50  ;;  %v708_v63 = vrot.slane %v700_v53, %v4370_v51  ;;  %v715_v1 = vrot.slane %v701_v12, %v4370_v51  ;;  %v1056_v27 = vrot.slane %v1048_v15, %v4370_v51 }
 0x31b   :  { %v1012_v25 = vcombine.low %v988_v22, %v1004_v18  ;;  %v1014_v26 = vcombine.low %v995_v23, %v1011_v19  ;;  %v1072_v49 = vrot.slane %v1064_v13, %v4370_v51  ;;  %v692_v54 = vrot.slane %v684_v20, %v4370_v51 }
 0x31c   :  { %v699_v28 = vrot.slane %v685_v21, %v4370_v51  ;;  %v752_v29 = vcombine.low %v4387_v57, %v4390_v58  ;;  %v769_v62 = vcombine.high %v4399_v8, %v4402_v9  ;;  %v776_v32 = vrot.slane %v768_v2, %v4370_v51 }
 0x31d   :  { %3879 = vmatpush3.xpose.msk.msra.mxu1 %vm1380_vm2, %v1012_v25  ;;  %3889 = vmatpush3.xpose.msk.msra.mxu0 %vm1380_vm2, %v1014_v26  ;;  %v716_v0 = vcombine.low %v692_v54, %v708_v63  ;;  %v1013_v33 = vcombine.high %v988_v22, %v1004_v18  ;;  %v1080_v34 = vcombine.low %v1056_v27, %v1072_v49 }
 0x31e   :  { %3883 = vmatprep.subr.mxu1 %v4122_v47  ;;  %v718_v31 = vcombine.low %v699_v28, %v715_v1  ;;  %3898 = vmatprep.subr.mxu0 %v4122_v47  ;;  %v1063_v36 = vrot.slane %v1049_v24, %v4370_v51  ;;  %v1079_v48 = vrot.slane %v1065_v3, %v4370_v51 }
 0x31f   :  { %v760_v8 = vrot.slane %v752_v29, %v4370_v51  ;;  %v753_v9 = vcombine.high %v4387_v57, %v4390_v58  ;;  %v717_v55 = vcombine.high %v692_v54, %v708_v63  ;;  %v783_v59 = vrot.slane %v769_v62, %v4370_v51 }
 0x320   :  { %3881 = vmatmul.mubr.msk.f32.vlgmr.msra.gmra.mxu1 %vm1380_vm2, %v716_v0  ;;  %3891 = vmatmul.mubr.msk.f32.vlgmr.msra.gmra.mxu0 %vm1380_vm2, %v718_v31  ;;  %v1015_v60 = vcombine.high %v995_v23, %v1011_v19  ;;  %v1082_v57 = vcombine.low %v1063_v36, %v1079_v48  ;;  %v719_v61 = vcombine.high %v699_v28, %v715_v1 }
 0x321   :  { %3884 = vmatpush3.xpose.msk.msra.mxu1 %vm1380_vm2, %v1013_v33  ;;  %3899 = vmatpush3.xpose.msk.msra.mxu0 %vm1380_vm2, %v1080_v34  ;;  %v784_v56 = vcombine.low %v760_v8, %v776_v32  ;;  %v767_v58 = vrot.slane %v753_v9, %v4370_v51  ;;  %v1081_v5 = vcombine.high %v1056_v27, %v1072_v49 }
 0x322   :  { %3885 = vmatprep.mubr.msk.f32.mxu1 %vm4123_vm1, %v4122_v47  ;;  %3900 = vmatprep.mubr.msk.f32.mxu0 %vm4123_vm1, %v4122_v47  ;;  %v785_v6 = vcombine.high %v760_v8, %v776_v32  ;;  %v1083_v10 = vcombine.high %v1063_v36, %v1079_v48 }
 0x323   :  { %3893 = vmatprep.subr.mxu1 %v4122_v47  ;;  %3908 = vmatprep.subr.mxu0 %v4122_v47  ;;  %v786_v4 = vcombine.low %v767_v58, %v783_v59  ;;  %v787_v50 = vcombine.high %v767_v58, %v783_v59 }
 0x324   :  { %3886 = vmatmul.mubr.msk.f32.vlgmr.msra.gmra.mxu1 %vm1380_vm2, %v717_v55  ;;  %3901 = vmatmul.mubr.msk.f32.vlgmr.msra.gmra.mxu0 %vm1380_vm2, %v784_v56 }
 0x325   :  { %3894 = vmatpush3.xpose.msk.msra.mxu1 %vm1380_vm2, %v1015_v60  ;;  %3909 = vmatpush3.xpose.msk.msra.mxu0 %vm1380_vm2, %v1082_v57 }
 0x326   :  { %3895 = vmatprep.mubr.msk.f32.mxu1 %vm4123_vm1, %v4122_v47  ;;  %3910 = vmatprep.mubr.msk.f32.mxu0 %vm4123_vm1, %v4122_v47 }
 0x327   :  { %3903 = vmatprep.subr.mxu1 %v4122_v47  ;;  %3918 = vmatprep.subr.mxu0 %v4122_v47 }
 0x328   :  { %3896 = vmatmul.mubr.msk.f32.vlgmr.msra.gmra.mxu1 %vm1380_vm2, %v719_v61  ;;  %3911 = vmatmul.mubr.msk.f32.vlgmr.msra.gmra.mxu0 %vm1380_vm2, %v786_v4 }
 0x329   :  { %3904 = vmatpush3.xpose.msk.msra.mxu1 %vm1380_vm2, %v1081_v5  ;;  %3905 = vmatprep.mubr.msk.f32.mxu1 %vm4123_vm1, %v4122_v47 }
 0x32a   :  { %3913 = vmatprep.subr.mxu1 %v4122_v47  ;;  %3920 = vmatprep.mubr.msk.f32.mxu0 %vm4123_vm1, %v4122_v47 }
 0x32c   :  { %3906 = vmatmul.mubr.msk.f32.vlgmr.msra.gmra.mxu1 %vm1380_vm2, %v785_v6 }
 0x32d   :  { %3914 = vmatpush3.xpose.msk.msra.mxu1 %vm1380_vm2, %v1083_v10  ;;  %3915 = vmatprep.mubr.msk.f32.mxu1 %vm4123_vm1, %v4122_v47 }
 0x32e   :  { %3923 = vmatprep.subr.mxu1 %v4122_v47 }
 0x330   :  { %3916 = vmatmul.mubr.msk.f32.vlgmr.msra.gmra.mxu1 %vm1380_vm2, %v787_v50 }
 0x331   :  { %3925 = vmatprep.mubr.msk.f32.mxu1 %vm4123_vm1, %v4122_v47 }
 0x3e0   :  { %v1453_v52 = vpop.f32.mrf.mxu1  ;;  %v1605_v11 = vpop.f32.mrf.mxu0 }
 0x3e1   :  { %v1989_v53 = vsel %vm1380_vm2, %v1453_v52, -inf  ;;  %v1995_v16 = vsel %vm1380_vm2, %v1605_v11, -inf }
 0x3e2   :  { %v3892_v12 = vpop.f32.mrf.mxu0  ;;  %1990 = vmax.xlane.f32.xlu0 %v1989_v53  ;;  %v3882_v13 = vpop.f32.mrf.mxu1 }
 0x3e4   :  { %v1529_v14 = vpop.f32.mrf.mxu1  ;;  %v1757_v15 = vpop.f32.mrf.mxu0 }
 0x3e5   :  { %v1992_v18 = vsel %vm1380_vm2, %v1529_v14, -inf  ;;  %v2001_v63 = vsel %vm1380_vm2, %v1757_v15, -inf }
 0x3e6   :  { %v3902_v19 = vpop.f32.mrf.mxu0  ;;  %1996 = vmax.xlane.f32.xlu0 %v1995_v16  ;;  %1993 = vmax.xlane.f32.xlu1 %v1992_v18  ;;  %v3887_v20 = vpop.f32.mrf.mxu1 }
 0x3e8   :  { %v1681_v21 = vpop.f32.mrf.mxu1  ;;  %v1909_v22 = vpop.f32.mrf.mxu0 }
 0x3e9   :  { %v1998_v23 = vsel %vm1380_vm2, %v1681_v21, -inf  ;;  %v2007_v27 = vsel %vm1380_vm2, %v1909_v22, -inf }
 0x3ea   :  { %v3912_v2 = vpop.f32.mrf.mxu0  ;;  %1999 = vmax.xlane.f32.xlu0 %v1998_v23  ;;  %v3897_v3 = vpop.f32.mrf.mxu1 }
 0x3ec   :  { %v1833_v24 = vpop.f32.mrf.mxu1 }
 0x3ed   :  { %v2004_v1 = vsel %vm1380_vm2, %v1833_v24, -inf }
 0x3ee   :  { %2002 = vmax.xlane.f32.xlu0 %v2001_v63  ;;  %2005 = vmax.xlane.f32.xlu1 %v2004_v1  ;;  %v3907_v25 = vpop.f32.mrf.mxu1 }
 0x3f0   :  { %v1985_v26 = vpop.f32.mrf.mxu1 }
 0x3f1   :  { %v2010_v49 = vsel %vm1380_vm2, %v1985_v26, -inf }
 0x3f2   :  { %2008 = vmax.xlane.f32.xlu0 %v2007_v27  ;;  %2011 = vmax.xlane.f32.xlu1 %v2010_v49  ;;  %v3917_v54 = vpop.f32.mrf.mxu1 }
 0x403   :  { %1086 = vrot.lane.b32.xlu1 %v4309_v35, %s4125_s26 }
 0x407   :  { %1088 = vrot.lane.b32.xlu1 %v4324_v42, %s4125_s26 }
 0x408   :  { %1084 = vrot.lane.b32.xlu0 %v4311_v37, %s4125_s26 }
 0x40b   :  { %1090 = vrot.lane.b32.xlu1 %v4321_v30, %s4125_s26 }
 0x40c   :  { %1092 = vrot.lane.b32.xlu0 %v4330_v44, %s4125_s26 }
 0x40f   :  { %1094 = vrot.lane.b32.xlu1 %v4327_v43, %s4125_s26 }
 0x410   :  { %1096 = vrot.lane.b32.xlu0 %v4335_v46, %s4125_s26 }
 0x413   :  { %1098 = vrot.lane.b32.xlu1 %v4333_v45, %s4125_s26 }
 0x46b   :  { %v1991_v28 = vpop.xlane.xlu0 %1990 }
 0x46c   :  { %v2013_v29 = vsub.f32 %v1453_v52, %v1991_v28 }
 0x46e   :  { %v2021_v62 = vmul.f32 1.442695, %v2013_v29 }
 0x46f   :  { %v1997_v0 = vpop.xlane.xlu0 %1996  ;;  %v1994_v31 = vpop.xlane.xlu1 %1993 }
 0x470   :  { %4038 = vpow2.f32 %v2021_v62  ;;  %v2015_v35 = vsub.f32 %v1605_v11, %v1997_v0  ;;  %v2014_v42 = vsub.f32 %v1529_v14, %v1994_v31 }
 0x472   :  { %v2025_v32 = vmul.f32 1.442695, %v2015_v35  ;;  %v2023_v37 = vmul.f32 1.442695, %v2014_v42 }
 0x473   :  { %v2000_v33 = vpop.xlane.xlu0 %1999 }
 0x474   :  { %4040 = vpow2.f32 %v2025_v32  ;;  %v2016_v30 = vsub.f32 %v1681_v21, %v2000_v33 }
 0x475   :  { %4042 = vpow2.f32 %v2023_v37 }
 0x476   :  { %v2027_v44 = vmul.f32 1.442695, %v2016_v30 }
 0x477   :  { %v2003_v43 = vpop.xlane.xlu0 %2002  ;;  %v2006_v34 = vpop.xlane.xlu1 %2005 }
 0x478   :  { %4044 = vpow2.f32 %v2027_v44  ;;  %v2017_v46 = vsub.f32 %v1757_v15, %v2003_v43  ;;  %v2018_v45 = vsub.f32 %v1833_v24, %v2006_v34 }
 0x47a   :  { %v2029_v36 = vmul.f32 1.442695, %v2017_v46  ;;  %v2031_v48 = vmul.f32 1.442695, %v2018_v45 }
 0x47b   :  { %v2009_v8 = vpop.xlane.xlu0 %2008  ;;  %v2012_v9 = vpop.xlane.xlu1 %2011 }
 0x47c   :  { %4046 = vpow2.f32 %v2029_v36  ;;  %v2019_v55 = vsub.f32 %v1909_v22, %v2009_v8  ;;  %v2020_v56 = vsub.f32 %v1985_v26, %v2012_v9 }
 0x47d   :  { %v4516_v59 = vpop.eup %4038  ;;  %4048 = vpow2.f32 %v2031_v48 }
 0x47e   :  { %v2033_v60 = vmul.f32 1.442695, %v2019_v55  ;;  %v2035_v57 = vmul.f32 1.442695, %v2020_v56  ;;  %v2037_v58 = vsel %vm1380_vm2, %v4516_v59, 0.0 }
 0x47f   :  { %2038 = vadd.xlane.f32.xlu0 %v2037_v58  ;;  %v1085_v61 = vpop.permute.xlu0 %1084  ;;  %v1087_v4 = vpop.permute.xlu1 %1086 }
 0x480   :  { %4050 = vpow2.f32 %v2033_v60 }
 0x481   :  { %v4520_v5 = vpop.eup %4040  ;;  %4052 = vpow2.f32 %v2035_v57 }
 0x482   :  { %v4522_v6 = vpop.eup %4042  ;;  %v2043_v10 = vsel %vm1380_vm2, %v4520_v5, 0.0 }
 0x483   :  { %2044 = vadd.xlane.f32.xlu0 %v2043_v10  ;;  %v1093_v50 = vpop.permute.xlu0 %1092  ;;  %v2040_v52 = vsel %vm1380_vm2, %v4522_v6, 0.0  ;;  %v1089_v11 = vpop.permute.xlu1 %1088 }
 0x484   :  { %2041 = vadd.xlane.f32.xlu1 %v2040_v52  ;;  %v1108_v12 = vcombine.low %v1085_v61, %v1093_v50  ;;  %v1109_v13 = vcombine.high %v1085_v61, %v1093_v50 }
 0x485   :  { %v4528_v53 = vpop.eup %4044 }
 0x486   :  { %v2046_v14 = vsel %vm1380_vm2, %v4528_v53, 0.0  ;;  %v1116_v21 = vrot.slane %v1108_v12, %v4194_v17  ;;  %v1123_v23 = vrot.slane %v1109_v13, %v4194_v17 }
 0x487   :  { %v1097_v15 = vpop.permute.xlu0 %1096  ;;  %v1091_v16 = vpop.permute.xlu1 %1090 }
 0x488   :  { %v1124_v18 = vcombine.low %v1089_v11, %v1097_v15  ;;  %v1125_v19 = vcombine.high %v1089_v11, %v1097_v15  ;;  %2047 = vadd.xlane.f32.xlu1 %v2046_v14 }
 0x489   :  { %v4532_v20 = vpop.eup %4046 }
 0x48a   :  { %v4535_v22 = vpop.eup %4048  ;;  %v1132_v2 = vrot.slane %v1124_v18, %v4194_v17  ;;  %v1139_v3 = vrot.slane %v1125_v19, %v4194_v17  ;;  %v2049_v24 = vsel %vm1380_vm2, %v4532_v20, 0.0 }
 0x48b   :  { %2050 = vadd.xlane.f32.xlu0 %v2049_v24  ;;  %v2052_v63 = vsel %vm1380_vm2, %v4535_v22, 0.0  ;;  %v1095_v1 = vpop.permute.xlu1 %1094 }
 0x48c   :  { %v1140_v25 = vcombine.low %v1116_v21, %v1132_v2  ;;  %v1141_v26 = vcombine.high %v1116_v21, %v1132_v2  ;;  %v1156_v27 = vcombine.low %v1123_v23, %v1139_v3  ;;  %v1157_v49 = vcombine.high %v1123_v23, %v1139_v3  ;;  %2053 = vadd.xlane.f32.xlu1 %v2052_v63 }
 0x48d   :  { %v4544_v54 = vpop.eup %4050  ;;  %v1176_v35 = vcombine.low %v1087_v4, %v1095_v1  ;;  %v1177_v42 = vcombine.high %v1087_v4, %v1095_v1 }
 0x48e   :  { %v4546_v28 = vpop.eup %4052  ;;  %v1148_v29 = vrot.slane %v1140_v25, %v4370_v51  ;;  %v1155_v62 = vrot.slane %v1141_v26, %v4370_v51  ;;  %v1164_v0 = vrot.slane %v1156_v27, %v4370_v51  ;;  %v1171_v31 = vrot.slane %v1157_v49, %v4370_v51 }
 0x48f   :  { %v2055_v32 = vsel %vm1380_vm2, %v4544_v54, 0.0  ;;  %v2058_v37 = vsel %vm1380_vm2, %v4546_v28, 0.0  ;;  %v1099_v33 = vpop.permute.xlu1 %1098  ;;  %v1184_v55 = vrot.slane %v1176_v35, %v4194_v17  ;;  %v1191_v56 = vrot.slane %v1177_v42, %v4194_v17 }
 0x490   :  { %v1244_v30 = vcombine.low %v1148_v29, %v1164_v0  ;;  %v1252_v44 = vcombine.low %v1155_v62, %v1171_v31  ;;  %v3765_v43 = vcombine.high %v1148_v29, %v1164_v0  ;;  %v3766_v34 = vcombine.high %v1155_v62, %v1171_v31  ;;  %2056 = vadd.xlane.f32.xlu0 %v2055_v32 }
 0x491   :  { %2059 = vadd.xlane.f32.xlu1 %v2058_v37  ;;  %v1192_v46 = vcombine.low %v1091_v16, %v1099_v33  ;;  %v1193_v45 = vcombine.high %v1091_v16, %v1099_v33 }
 0x492   :  { %v1251_v36 = vrot.slane %v1244_v30, %v4194_v17  ;;  %v1259_v48 = vrot.slane %v1252_v44, %v4194_v17  ;;  %v1319_v8 = vrot.slane %v3765_v43, %v4194_v17  ;;  %v1327_v9 = vrot.slane %v3766_v34, %v4194_v17 }
 0x493   :  { %v1200_v60 = vrot.slane %v1192_v46, %v4194_v17  ;;  %v1207_v57 = vrot.slane %v1193_v45, %v4194_v17 }
 0x494   :  { %v1277_v58 = vcombine.high %v1251_v36, %v1259_v48  ;;  %v1344_v61 = vcombine.low %v1319_v8, %v1327_v9  ;;  %v1345_v4 = vcombine.high %v1319_v8, %v1327_v9  ;;  %v1276_v23 = vcombine.low %v1251_v36, %v1259_v48 }
 0x495   :  { %v1208_v10 = vcombine.low %v1184_v55, %v1200_v60  ;;  %v1209_v50 = vcombine.high %v1184_v55, %v1200_v60  ;;  %v1224_v52 = vcombine.low %v1191_v56, %v1207_v57  ;;  %v1225_v11 = vcombine.high %v1191_v56, %v1207_v57 }
 0x496   :  { %v1284_v49 = vrot.slane %v1276_v23, %v4370_v51  ;;  %v1291_v29 = vrot.slane %v1277_v58, %v4370_v51  ;;  %v1352_v42 = vrot.slane %v1344_v61, %v4370_v51  ;;  %v1359_v32 = vrot.slane %v1345_v4, %v4370_v51 }
 0x497   :  { %v1216_v12 = vrot.slane %v1208_v10, %v4370_v51  ;;  %v1223_v13 = vrot.slane %v1209_v50, %v4370_v51  ;;  %v1232_v14 = vrot.slane %v1224_v52, %v4370_v51  ;;  %v1239_v15 = vrot.slane %v1225_v11, %v4370_v51 }
 0x499   :  { %v1260_v16 = vcombine.low %v1216_v12, %v1232_v14  ;;  %v1268_v18 = vcombine.low %v1223_v13, %v1239_v15  ;;  %v3767_v19 = vcombine.high %v1216_v12, %v1232_v14  ;;  %v3768_v21 = vcombine.high %v1223_v13, %v1239_v15 }
 0x49b   :  { %v1267_v2 = vrot.slane %v1260_v16, %v4194_v17  ;;  %v1275_v3 = vrot.slane %v1268_v18, %v4194_v17  ;;  %v1335_v24 = vrot.slane %v3767_v19, %v4194_v17  ;;  %v1343_v63 = vrot.slane %v3768_v21, %v4194_v17 }
 0x49d   :  { %v1292_v1 = vcombine.low %v1267_v2, %v1275_v3  ;;  %v1293_v25 = vcombine.high %v1267_v2, %v1275_v3  ;;  %v1360_v26 = vcombine.low %v1335_v24, %v1343_v63  ;;  %v1361_v27 = vcombine.high %v1335_v24, %v1343_v63 }
 0x49f   :  { %v1300_v62 = vrot.slane %v1292_v1, %v4370_v51  ;;  %v1307_v0 = vrot.slane %v1293_v25, %v4370_v51  ;;  %v1368_v31 = vrot.slane %v1360_v26, %v4370_v51  ;;  %v4578_v35 = vrot.slane %v1361_v27, %v4370_v51 }
 0x4a1   :  { %v1308_v37 = vcombine.low %v1284_v49, %v1300_v62  ;;  %v1309_v33 = vcombine.high %v1284_v49, %v1300_v62  ;;  %v1310_v30 = vcombine.low %v1291_v29, %v1307_v0  ;;  %v1311_v44 = vcombine.high %v1291_v29, %v1307_v0 }
 0x4a2   :  { %v1376_v43 = vcombine.low %v1352_v42, %v1368_v31  ;;  %v1377_v34 = vcombine.high %v1352_v42, %v1368_v31  ;;  %v1378_v46 = vcombine.low %v1359_v32, %v4578_v35  ;;  %v1379_v45 = vcombine.high %v1359_v32, %v4578_v35 }
 0x4a3   :  { %3919 = vmatpush3.msra.mxu0 %v1308_v37  ;;  %3924 = vmatpush3.msra.mxu1 %v1309_v33 }
 0x4a4   :  { %3928 = vmatprep.subr.mxu0 %v4122_v47  ;;  %3933 = vmatprep.subr.mxu1 %v4122_v47 }
 0x508   :  { %v2039_v36 = vpop.xlane.xlu0 %2038 }
 0x509   :  { %4054 = vrcp.f32 %v2039_v36 }
 0x50c   :  { %v2045_v48 = vpop.xlane.xlu0 %2044 }
 0x50d   :  { %4056 = vrcp.f32 %v2045_v48  ;;  %v2042_v8 = vpop.xlane.xlu1 %2041 }
 0x50e   :  { %4058 = vrcp.f32 %v2042_v8 }
 0x511   :  { %v2048_v9 = vpop.xlane.xlu1 %2047 }
 0x512   :  { %4060 = vrcp.f32 %v2048_v9 }
 0x514   :  { %v2051_v55 = vpop.xlane.xlu0 %2050 }
 0x515   :  { %4062 = vrcp.f32 %v2051_v55  ;;  %v2054_v56 = vpop.xlane.xlu1 %2053 }
 0x516   :  { %v4055_v60 = vpop.eup %4054  ;;  %4064 = vrcp.f32 %v2054_v56 }
 0x517   :  { %v2069_v57 = vmul.f32 %v4055_v60, %v4516_v59 }
 0x519   :  { %v2057_v58 = vpop.xlane.xlu0 %2056  ;;  %3921 = vmatmul.mubr.msk.f32.vlgmr.msra.gmra.mxu0 %vm1380_vm2, %v2069_v57 }
 0x51a   :  { %v4057_v61 = vpop.eup %4056  ;;  %4066 = vrcp.f32 %v2057_v58  ;;  %v2060_v4 = vpop.xlane.xlu1 %2059  ;;  %3929 = vmatpush3.msra.mxu0 %v1310_v30  ;;  %3930 = vmatprep.mubr.msk.f32.mxu0 %vm4123_vm1, %v4122_v47 }
 0x51b   :  { %v4059_v10 = vpop.eup %4058  ;;  %4068 = vrcp.f32 %v2060_v4  ;;  %3938 = vmatprep.subr.mxu0 %v4122_v47  ;;  %v2071_v50 = vmul.f32 %v4057_v61, %v4520_v5 }
 0x51c   :  { %v2070_v52 = vmul.f32 %v4059_v10, %v4522_v6 }
 0x51d   :  { %3931 = vmatmul.mubr.msk.f32.vlgmr.msra.gmra.mxu0 %vm1380_vm2, %v2071_v50 }
 0x51e   :  { %3926 = vmatmul.mubr.msk.f32.vlgmr.msra.gmra.mxu1 %vm1380_vm2, %v2070_v52  ;;  %3939 = vmatpush3.msra.mxu0 %v1376_v43 }
 0x51f   :  { %v4061_v59 = vpop.eup %4060  ;;  %3934 = vmatpush3.msra.mxu1 %v1311_v44  ;;  %3935 = vmatprep.mubr.msk.f32.mxu1 %vm4123_vm1, %v4122_v47 }
 0x520   :  { %3943 = vmatprep.subr.mxu1 %v4122_v47  ;;  %v2072_v11 = vmul.f32 %v4061_v59, %v4528_v53  ;;  %3940 = vmatprep.mubr.msk.f32.mxu0 %vm4123_vm1, %v4122_v47 }
 0x521   :  { %3948 = vmatprep.subr.mxu0 %v4122_v47 }
 0x522   :  { %v4063_v5 = vpop.eup %4062  ;;  %3936 = vmatmul.mubr.msk.f32.vlgmr.msra.gmra.mxu1 %vm1380_vm2, %v2072_v11 }
 0x523   :  { %v4065_v6 = vpop.eup %4064  ;;  %3944 = vmatpush3.msra.mxu1 %v1377_v34  ;;  %3945 = vmatprep.mubr.msk.f32.mxu1 %vm4123_vm1, %v4122_v47  ;;  %v2073_v12 = vmul.f32 %v4063_v5, %v4532_v20 }
 0x524   :  { %3953 = vmatprep.subr.mxu1 %v4122_v47  ;;  %v2074_v13 = vmul.f32 %v4065_v6, %v4535_v22 }
 0x525   :  { %3941 = vmatmul.mubr.msk.f32.vlgmr.msra.gmra.mxu0 %vm1380_vm2, %v2073_v12 }
 0x526   :  { %3946 = vmatmul.mubr.msk.f32.vlgmr.msra.gmra.mxu1 %vm1380_vm2, %v2074_v13  ;;  %3949 = vmatpush3.msra.mxu0 %v1378_v46 }
 0x527   :  { %v4067_v53 = vpop.eup %4066  ;;  %3954 = vmatpush3.msra.mxu1 %v1379_v45  ;;  %3950 = vmatprep.mubr.msk.f32.mxu0 %vm4123_vm1, %v4122_v47 }
 0x528   :  { %v4069_v14 = vpop.eup %4068  ;;  %3955 = vmatprep.mubr.msk.f32.mxu1 %vm4123_vm1, %v4122_v47  ;;  %v2075_v20 = vmul.f32 %v4067_v53, %v4544_v54 }
 0x529   :  { %v2076_v15 = vmul.f32 %v4069_v14, %v4546_v28 }
 0x52a   :  { %3951 = vmatmul.mubr.msk.f32.vlgmr.msra.gmra.mxu0 %vm1380_vm2, %v2075_v20 }
 0x52b   :  { %3956 = vmatmul.mubr.msk.f32.vlgmr.msra.gmra.mxu1 %vm1380_vm2, %v2076_v15 }
 0x5d9   :  { %v2146_v22 = vpop.f32.mrf.mxu0 }
 0x5db   :  { %v3922_v16 = vpop.f32.mrf.mxu0 }
 0x5dd   :  { %v2292_v18 = vpop.f32.mrf.mxu0 }
 0x5de   :  { %v2219_v19 = vpop.f32.mrf.mxu1  ;;  %v2661_v2 = vcombine.low %v2146_v22, %v2292_v18  ;;  %v2662_v3 = vcombine.high %v2146_v22, %v2292_v18  ;;  %v2968_v22 = vld [vmem:[%s4893_s3 + $0x18] sm:$0xff] }
 0x5df   :  { %v3932_v21 = vpop.f32.mrf.mxu0  ;;  %3958 = vmatprep.subr.mxu1 %v2968_v22 }
 0x5e0   :  { %v3927_v23 = vpop.f32.mrf.mxu1  ;;  %v2669_v54 = vrot.slane %v2661_v2, %v4194_v17  ;;  %v2676_v28 = vrot.slane %v2662_v3, %v4194_v17  ;;  %3959 = vmatpush3.msra.mxu1 %v2968_v22 }
 0x5e2   :  { %v2365_v24 = vpop.f32.mrf.mxu1 }
 0x5e3   :  { %v2677_v63 = vcombine.low %v2219_v19, %v2365_v24  ;;  %v2678_v1 = vcombine.high %v2219_v19, %v2365_v24 }
 0x5e4   :  { %v3937_v25 = vpop.f32.mrf.mxu1 }
 0x5e5   :  { %v2685_v26 = vrot.slane %v2677_v63, %v4194_v17  ;;  %v2692_v27 = vrot.slane %v2678_v1, %v4194_v17  ;;  %v2438_v49 = vpop.f32.mrf.mxu0 }
 0x5e6   :  { %v2511_v29 = vpop.f32.mrf.mxu1 }
 0x5e7   :  { %v2693_v62 = vcombine.low %v2669_v54, %v2685_v26  ;;  %v2694_v0 = vcombine.high %v2669_v54, %v2685_v26  ;;  %v2709_v31 = vcombine.low %v2676_v28, %v2692_v27  ;;  %v2710_v35 = vcombine.high %v2676_v28, %v2692_v27  ;;  %v3942_v42 = vpop.f32.mrf.mxu0  ;;  %v2967_v28 = vld [vmem:[%s4893_s3 + $0x10] sm:$0xff] }
 0x5e8   :  { %v3947_v32 = vpop.f32.mrf.mxu1  ;;  %3960 = vmatprep.subr.mxu1 %v2967_v28 }
 0x5e9   :  { %v2701_v33 = vrot.slane %v2693_v62, %v4370_v51  ;;  %v2708_v30 = vrot.slane %v2694_v0, %v4370_v51  ;;  %v2717_v44 = vrot.slane %v2709_v31, %v4370_v51  ;;  %v2724_v43 = vrot.slane %v2710_v35, %v4370_v51  ;;  %3961 = vmatpush3.msra.mxu1 %v2967_v28 }
 0x5ea   :  { %v2584_v37 = vpop.f32.mrf.mxu0 }
 0x5eb   :  { %v2657_v34 = vpop.f32.mrf.mxu1  ;;  %v2729_v46 = vcombine.low %v2438_v49, %v2584_v37  ;;  %v2730_v45 = vcombine.high %v2438_v49, %v2584_v37  ;;  %v2725_v58 = vcombine.high %v2701_v33, %v4122_v47  ;;  %v2726_v61 = vcombine.high %v2708_v30, %v4122_v47 }
 0x5ec   :  { %v2745_v36 = vcombine.low %v2511_v29, %v2657_v34  ;;  %v2746_v48 = vcombine.high %v2511_v29, %v2657_v34  ;;  %v3952_v8 = vpop.f32.mrf.mxu0  ;;  %v2727_v4 = vcombine.high %v2717_v44, %v4122_v47  ;;  %v2728_v10 = vcombine.high %v2724_v43, %v4122_v47 }
 0x5ed   :  { %v3957_v9 = vpop.f32.mrf.mxu1  ;;  %v2737_v55 = vrot.slane %v2729_v46, %v4194_v17  ;;  %v2744_v56 = vrot.slane %v2730_v45, %v4194_v17  ;;  %v2797_v53 = vcombine.low %v2701_v33, %v2725_v58  ;;  %v2813_v14 = vcombine.low %v2708_v30, %v2726_v61  ;;  %v2965_v30 = vld [vmem:[%s4893_s3] sm:$0xff] }
 0x5ee   :  { %v2753_v60 = vrot.slane %v2745_v36, %v4194_v17  ;;  %v2760_v57 = vrot.slane %v2746_v48, %v4194_v17  ;;  %v2865_v20 = vcombine.low %v2717_v44, %v2727_v4  ;;  %v2881_v15 = vcombine.low %v2724_v43, %v2728_v10 }
 0x5ef   :  { %v2804_v25 = vrot.slane %v2797_v53, %v4194_v17  ;;  %v2820_v54 = vrot.slane %v2813_v14, %v4194_v17 }
 0x5f0   :  { %v2761_v50 = vcombine.low %v2737_v55, %v2753_v60  ;;  %v2762_v52 = vcombine.high %v2737_v55, %v2753_v60  ;;  %v2777_v59 = vcombine.low %v2744_v56, %v2760_v57  ;;  %v2778_v11 = vcombine.high %v2744_v56, %v2760_v57 }
 0x5f1   :  { %v2872_v63 = vrot.slane %v2865_v20, %v4194_v17  ;;  %v2888_v1 = vrot.slane %v2881_v15, %v4194_v17  ;;  %v2971_v20 = vsub.s32 4, %v4179_v7  ;;  %v4678_v15 = vld [vmem:[%s4891_s1] sm:$0xff] }
 0x5f2   :  { %v2769_v5 = vrot.slane %v2761_v50, %v4370_v51  ;;  %v2776_v6 = vrot.slane %v2762_v52, %v4370_v51  ;;  %v2785_v12 = vrot.slane %v2777_v59, %v4370_v51  ;;  %v2792_v13 = vrot.slane %v2778_v11, %v4370_v51 }
 0x5f3   :  { %v2972_v22 = vrot.slane %v4678_v15, %v2971_v20 }
 0x5f4   :  { %v2793_v16 = vcombine.high %v2769_v5, %v4122_v47  ;;  %v2794_v18 = vcombine.high %v2776_v6, %v4122_v47  ;;  %v2795_v19 = vcombine.high %v2785_v12, %v4122_v47  ;;  %v2796_v21 = vcombine.high %v2792_v13, %v4122_v47  ;;  %v2966_v47 = vld [vmem:[%s4893_s3 + $0x8] sm:$0xff]  ;;  %s4126_s3 = smov 8  }
 0x5f5   :  { %3962 = vmatprep.subr.mxu1 %v2966_v47 }
 0x5f6   :  { %v2805_v23 = vcombine.low %v2769_v5, %v2793_v16  ;;  %v2821_v2 = vcombine.low %v2776_v6, %v2794_v18  ;;  %v2873_v3 = vcombine.low %v2785_v12, %v2795_v19  ;;  %v2889_v24 = vcombine.low %v2792_v13, %v2796_v21  ;;  %3963 = vmatpush3.msra.mxu1 %v2966_v47  ;;  %v4084_v47 = vld [vmem:[%s4890_s0 + $0xa] sm:$0x3] }
 0x5f7   :  { %3964 = vmatprep.subr.mxu1 %v2965_v30 }
 0x5f8   :  { %v2880_v26 = vrot.slane %v2873_v3, %v4194_v17  ;;  %v2896_v27 = vrot.slane %v2889_v24, %v4194_v17  ;;  %v2812_v49 = vrot.slane %v2805_v23, %v4194_v17  ;;  %v2828_v29 = vrot.slane %v2821_v2, %v4194_v17  ;;  %3965 = vmatpush3.msra.mxu1 %v2965_v30 }
 0x5fa   :  { %v2897_v62 = vcombine.low %v2872_v63, %v2880_v26  ;;  %v2913_v0 = vcombine.low %v2888_v1, %v2896_v27  ;;  %v2829_v31 = vcombine.low %v2804_v25, %v2812_v49  ;;  %v2845_v35 = vcombine.low %v2820_v54, %v2828_v29 }
 0x5fb   :  { %v2898_v42 = vcombine.high %v2872_v63, %v2880_v26  ;;  %v2914_v32 = vcombine.high %v2888_v1, %v2896_v27  ;;  %v2830_v37 = vcombine.high %v2804_v25, %v2812_v49  ;;  %v2846_v33 = vcombine.high %v2820_v54, %v2828_v29  ;;  %v4083_v54 = vld [vmem:[%s4890_s0 + $0x8] sm:$0x3]  ;;  %v4085_v29 = vld [vmem:[%s4890_s0 + $0xc] sm:$0x3] }
 0x5fc   :  { %v2905_v44 = vrot.slane %v2897_v62, %v4370_v51  ;;  %v2921_v43 = vrot.slane %v2913_v0, %v4370_v51  ;;  %v2837_v34 = vrot.slane %v2829_v31, %v4370_v51  ;;  %v2853_v46 = vrot.slane %v2845_v35, %v4370_v51  ;;  %v4086_v0 = vld [vmem:[%s4890_s0 + $0xe] sm:$0x3] }
 0x5fd   :  { %v2912_v45 = vrot.slane %v2898_v42, %v4370_v51  ;;  %v2928_v36 = vrot.slane %v2914_v32, %v4370_v51  ;;  %v2844_v48 = vrot.slane %v2830_v37, %v4370_v51  ;;  %v2860_v8 = vrot.slane %v2846_v33, %v4370_v51  ;;  %v4087_v32 = vld [vmem:[%s4890_s0] sm:$0x3]  ;;  %v4088_v33 = vld [vmem:[%s4890_s0 + $0x2] sm:$0x3] }
 0x5fe   :  { %v2930_v9 = vcombine.high %v2905_v44, %v2921_v43  ;;  %v2862_v55 = vcombine.high %v2837_v34, %v2853_v46  ;;  %v2929_v56 = vcombine.low %v2905_v44, %v2921_v43  ;;  %v2861_v60 = vcombine.low %v2837_v34, %v2853_v46  ;;  %v4089_v44 = vld [vmem:[%s4890_s0 + $0x4] sm:$0x3]  ;;  %v4090_v34 = vld [vmem:[%s4890_s0 + $0x6] sm:$0x3] }
 0x5ff   :  { %v2931_v57 = vcombine.low %v2912_v45, %v2928_v36  ;;  %v2863_v58 = vcombine.low %v2844_v48, %v2860_v8  ;;  %v2932_v61 = vcombine.high %v2912_v45, %v2928_v36  ;;  %v2864_v4 = vcombine.high %v2844_v48, %v2860_v8 }
 0x600   :  { %2937 = vrot.lane.b32.xlu1 %v2930_v9, %s4126_s3  ;;  %2935 = vrot.lane.b32.xlu0 %v2862_v55, %s4126_s3 }
 0x604   :  { %2945 = vrot.lane.b32.xlu1 %v2931_v57, %s4127_s11  ;;  %2943 = vrot.lane.b32.xlu0 %v2863_v58, %s4127_s11 }
 0x608   :  { %2953 = vrot.lane.b32.xlu1 %v2932_v61, %s4128_s12  ;;  %2951 = vrot.lane.b32.xlu0 %v2864_v4, %s4128_s12 }
 0x672   :  { %v2938_v10 = vpop.permute.xlu1 %2937  ;;  %v2936_v51 = vpop.permute.xlu0 %2935 }
 0x673   :  { %v2958_v59 = vsel %vm1380_vm2, %v2929_v56, %v2938_v10  ;;  %v2957_v11 = vsel %vm1380_vm2, %v2861_v60, %v2936_v51 }
 0x676   :  { %v2946_v50 = vpop.permute.xlu1 %2945  ;;  %v2944_v52 = vpop.permute.xlu0 %2943 }
 0x677   :  { %v2961_v5 = vsel %vm2959_vm3, %v2958_v59, %v2946_v50  ;;  %v2960_v6 = vsel %vm2959_vm3, %v2957_v11, %v2944_v52 }
 0x67a   :  { %v2954_v12 = vpop.permute.xlu1 %2953  ;;  %v2952_v13 = vpop.permute.xlu0 %2951 }
 0x67b   :  { %v2964_v53 = vsel %vm2962_vm4, %v2961_v5, %v2954_v12  ;;  %v2963_v14 = vsel %vm2962_vm4, %v2960_v6, %v2952_v13 }
 0x67c   :  { %3966 = vmatprep.mubr.msk.f32.mxu1 %vm77_vm0, %v2963_v14 }
 0x67d   :  { %3967 = vmatmul.mubr.msk.f32.vlgmr.msra.gmra.mxu1 %vm77_vm0, %v2964_v53 }
 0x73d   :  { %v3968_v16 = vpop.f32.mrf.mxu1 }
 0x73e   :  { %v3051_v18 = vadd.f32 %v3968_v16, %v2972_v22 }
 0x73f   :  { %v3045_v19 = vpop.f32.mrf.mxu1 }
 0x740   :  { %v3073_v21 = vcombine.high %v3051_v18, %v3051_v18  ;;  %v3080_v23 = vrot.slane %v3051_v18, %v4194_v17  ;;  %v3046_v2 = vadd.f32 %v3045_v19, %v2972_v22 }
 0x742   :  { %v3087_v3 = vrot.slane %v3073_v21, %v4194_v17  ;;  %v3088_v24 = vcombine.high %v3080_v23, %v3080_v23  ;;  %v3056_v63 = vcombine.high %v3046_v2, %v3046_v2  ;;  %v3063_v1 = vrot.slane %v3046_v2, %v4194_v17 }
 0x743   :  { %v4687_v28 = vadd.f32 %v4083_v54, %v3080_v23 }
 0x744   :  { %v3089_v25 = vcombine.high %v3087_v3, %v3087_v3  ;;  %v4692_v26 = vadd.f32 %v4084_v47, %v3088_v24  ;;  %v3070_v27 = vrot.slane %v3056_v63, %v4194_v17  ;;  %v3071_v49 = vcombine.high %v3063_v1, %v3063_v1 }
 0x745   :  { %v4698_v62 = vadd.f32 %v4085_v29, %v3087_v3  ;;  %v4710_v37 = vadd.f32 %v4087_v32, %v3063_v1 }
 0x746   :  { %v4703_v31 = vadd.f32 %v4086_v0, %v3089_v25  ;;  %v3072_v35 = vcombine.high %v3070_v27, %v3070_v27  ;;  %v3131_v42 = vcombine.low %v4687_v28, %v4692_v26  ;;  %v4715_v30 = vadd.f32 %v4088_v33, %v3071_v49 }
 0x747   :  { %v4720_v43 = vadd.f32 %v4089_v44, %v3070_v27 }
 0x748   :  { %v4725_v46 = vadd.f32 %v4090_v34, %v3072_v35  ;;  %v3132_v45 = vcombine.low %v4698_v62, %v4703_v31  ;;  %v3114_v36 = vcombine.low %v4710_v37, %v4715_v30  ;;  %v3139_v48 = vrot.slane %v3131_v42, %v4194_v17 }
 0x74a   :  { %v3146_v8 = vrot.slane %v3132_v45, %v4194_v17  ;;  %v3115_v9 = vcombine.low %v4720_v43, %v4725_v46  ;;  %v3122_v56 = vrot.slane %v3114_v36, %v4194_v17 }
 0x74c   :  { %v3147_v55 = vcombine.low %v3139_v48, %v3146_v8  ;;  %v3129_v60 = vrot.slane %v3115_v9, %v4194_v17  ;;  %v3441_v48 = vld [vmem:[%s4894_s4 + $0x18] sm:$0xff]  ;;  %v3440_v8 = vld [vmem:[%s4894_s4 + $0x10] sm:$0xff]  ;;  %v3439_v9 = vld [vmem:[%s4894_s4 + $0x8] sm:$0xff] }
 0x74d   :  { %3969 = vmatprep.subr.mxu1 %v3441_v48 }
 0x74e   :  { %v3153_v57 = vsel %vm77_vm0, %v3147_v55, 0.0  ;;  %v3130_v58 = vcombine.low %v3122_v56, %v3129_v60  ;;  %3970 = vmatpush3.msra.mxu1 %v3441_v48  ;;  %v3438_v55 = vld [vmem:[%s4894_s4] sm:$0xff] }
 0x74f   :  { %3154 = vadd.xlane.f32.xlu1 %v3153_v57  ;;  %3971 = vmatprep.subr.mxu1 %v3440_v8 }
 0x750   :  { %v3150_v61 = vsel %vm77_vm0, %v3130_v58, 0.0  ;;  %3972 = vmatpush3.msra.mxu1 %v3440_v8 }
 0x751   :  { %3151 = vadd.xlane.f32.xlu0 %v3150_v61  ;;  %3973 = vmatprep.subr.mxu1 %v3439_v9  ;;  %v3372_v61 = vsub.s32 2, %v4179_v7 }
 0x752   :  { %3974 = vmatpush3.msra.mxu1 %v3439_v9 }
 0x753   :  { %3975 = vmatprep.subr.mxu1 %v3438_v55 }
 0x754   :  { %3976 = vmatpush3.msra.mxu1 %v3438_v55 }
 0x7d8   :  { %v3155_v4 = vpop.xlane.xlu1 %3154 }
 0x7d9   :  { %v3157_v10 = vmul.f32 0.03125, %v3155_v4 }
 0x7da   :  { %v3152_v51 = vpop.xlane.xlu0 %3151 }
 0x7db   :  { %v3194_v50 = vrot.slane %v3157_v10, %v4203_v38  ;;  %v3201_v52 = vrot.slane %v3157_v10, %v4206_v39  ;;  %v3208_v59 = vrot.slane %v3157_v10, %v4209_v40  ;;  %v3215_v11 = vrot.slane %v3157_v10, %v4212_v41 }
 0x7dc   :  { %v3156_v5 = vmul.f32 0.03125, %v3152_v51  ;;  %v3406_v10 = vsub.s32 3, %v4179_v7 }
 0x7dd   :  { %v4744_v6 = vsub.f32 %v4687_v28, %v3194_v50  ;;  %v4747_v12 = vsub.f32 %v4692_v26, %v3201_v52  ;;  %v4750_v13 = vsub.f32 %v4698_v62, %v3208_v59  ;;  %v4753_v53 = vsub.f32 %v4703_v31, %v3215_v11 }
 0x7de   :  { %v3166_v14 = vrot.slane %v3156_v5, %v4203_v38  ;;  %v3173_v20 = vrot.slane %v3156_v5, %v4206_v39  ;;  %v3180_v22 = vrot.slane %v3156_v5, %v4209_v40  ;;  %v3187_v16 = vrot.slane %v3156_v5, %v4212_v41 }
 0x7df   :  { %v3236_v18 = vmul.f32 %v4744_v6, %v4744_v6  ;;  %v3237_v19 = vmul.f32 %v4747_v12, %v4747_v12  ;;  %v3238_v21 = vmul.f32 %v4750_v13, %v4750_v13  ;;  %v3239_v23 = vmul.f32 %v4753_v53, %v4753_v53 }
 0x7e0   :  { %v3224_v2 = vsub.f32 %v4710_v37, %v3166_v14  ;;  %v3225_v3 = vsub.f32 %v4715_v30, %v3173_v20  ;;  %v3226_v24 = vsub.f32 %v4720_v43, %v3180_v22  ;;  %v3227_v63 = vsub.f32 %v4725_v46, %v3187_v16 }
 0x7e1   :  { %v3265_v1 = vcombine.low %v3236_v18, %v3237_v19  ;;  %v3266_v25 = vcombine.low %v3238_v21, %v3239_v23  ;;  %v3373_v50 = vrot.slane %v4678_v15, %v3372_v61  ;;  %v3407_v52 = vrot.slane %v4678_v15, %v3406_v10 }
 0x7e2   :  { %v3232_v54 = vmul.f32 %v3224_v2, %v3224_v2  ;;  %v3233_v47 = vmul.f32 %v3225_v3, %v3225_v3  ;;  %v3234_v27 = vmul.f32 %v3226_v24, %v3226_v24  ;;  %v3235_v49 = vmul.f32 %v3227_v63, %v3227_v63 }
 0x7e3   :  { %v3273_v32 = vrot.slane %v3265_v1, %v4194_v17  ;;  %v3280_v33 = vrot.slane %v3266_v25, %v4194_v17  ;;  %v3375_v59 = vcombine.high %v3373_v50, %v3373_v50  ;;  %v3382_v11 = vrot.slane %v3373_v50, %v4194_v17 }
 0x7e4   :  { %v3248_v29 = vcombine.low %v3232_v54, %v3233_v47  ;;  %v3249_v0 = vcombine.low %v3234_v27, %v3235_v49  ;;  %v3409_v5 = vcombine.high %v3407_v52, %v3407_v52  ;;  %v3416_v20 = vrot.slane %v3407_v52, %v4194_v17 }
 0x7e5   :  { %v3281_v45 = vcombine.low %v3273_v32, %v3280_v33  ;;  %v3389_v14 = vrot.slane %v3375_v59, %v4194_v17  ;;  %v3390_v16 = vcombine.high %v3382_v11, %v3382_v11 }
 0x7e6   :  { %v3256_v35 = vrot.slane %v3248_v29, %v4194_v17  ;;  %v3263_v42 = vrot.slane %v3249_v0, %v4194_v17  ;;  %v3423_v18 = vrot.slane %v3409_v5, %v4194_v17  ;;  %v3424_v54 = vcombine.high %v3416_v20, %v3416_v20  ;;  %v3597_v5 = vld [vmem:[%s4895_s5 + $0x70] sm:$0xff] }
 0x7e7   :  { %v3287_v36 = vsel %vm77_vm0, %v3281_v45, 0.0  ;;  %v3391_v25 = vcombine.high %v3389_v14, %v3389_v14 }
 0x7e8   :  { %v3264_v44 = vcombine.low %v3256_v35, %v3263_v42  ;;  %v3425_v35 = vcombine.high %v3423_v18, %v3423_v18 }
 0x7ea   :  { %v3284_v34 = vsel %vm77_vm0, %v3264_v44, 0.0 }
 0x7eb   :  { %3285 = vadd.xlane.f32.xlu0 %v3284_v34 }
 0x7ef   :  { %3288 = vadd.xlane.f32.xlu0 %v3287_v36 }
 0x874   :  { %v3286_v56 = vpop.xlane.xlu0 %3285 }
 0x875   :  { %v3290_v60 = vmul.f32 0.03125, %v3286_v56 }
 0x877   :  { %v3292_v57 = vadd.f32 1e-05, %v3290_v60 }
 0x878   :  { %v3289_v58 = vpop.xlane.xlu0 %3288 }
 0x879   :  { %4070 = vrsqrt.f32 %v3292_v57  ;;  %v3291_v4 = vmul.f32 0.03125, %v3289_v58 }
 0x87b   :  { %v3293_v51 = vadd.f32 1e-05, %v3291_v4 }
 0x87d   :  { %4072 = vrsqrt.f32 %v3293_v51 }
 0x886   :  { %v4071_v22 = vpop.eup %4070 }
 0x887   :  { %v3304_v19 = vrot.slane %v4071_v22, %v4203_v38  ;;  %v3311_v21 = vrot.slane %v4071_v22, %v4206_v39  ;;  %v3318_v23 = vrot.slane %v4071_v22, %v4209_v40  ;;  %v3325_v1 = vrot.slane %v4071_v22, %v4212_v41  ;;  %v3594_v22 = vld [vmem:[%s4895_s5 + $0x58] sm:$0xff] }
 0x889   :  { %v3362_v47 = vmul.f32 %v3304_v19, %v3224_v2  ;;  %v3363_v27 = vmul.f32 %v3311_v21, %v3225_v3  ;;  %v3364_v49 = vmul.f32 %v3318_v23, %v3226_v24  ;;  %v3365_v29 = vmul.f32 %v3325_v1, %v3227_v63  ;;  %v3591_v19 = vld [vmem:[%s4895_s5 + $0x40] sm:$0xff]  ;;  %v3590_v21 = vld [vmem:[%s4895_s5 + $0x38] sm:$0xff]  ;;  %v3589_v23 = vld [vmem:[%s4895_s5 + $0x30] sm:$0xff] }
 0x88a   :  { %v4073_v0 = vpop.eup %4072  ;;  %v3588_v1 = vld [vmem:[%s4895_s5 + $0x28] sm:$0xff] }
 0x88b   :  { %v3339_v42 = vrot.slane %v4073_v0, %v4206_v39  ;;  %v3353_v32 = vrot.slane %v4073_v0, %v4212_v41  ;;  %v3396_v33 = vmul.f32 %v3382_v11, %v3362_v47  ;;  %v3397_v44 = vmul.f32 %v3390_v16, %v3363_v27  ;;  %v3585_v47 = vld [vmem:[%s4895_s5 + $0x10] sm:$0xff]  ;;  %v3584_v27 = vld [vmem:[%s4895_s5 + $0x8] sm:$0xff] }
 0x88c   :  { %v3398_v34 = vmul.f32 %v3389_v14, %v3364_v49  ;;  %v3399_v45 = vmul.f32 %v3391_v25, %v3365_v29  ;;  %v3332_v36 = vrot.slane %v4073_v0, %v4203_v38  ;;  %v3346_v48 = vrot.slane %v4073_v0, %v4209_v40  ;;  %v3583_v49 = vld [vmem:[%s4895_s5] sm:$0xff] }
 0x88d   :  { %v3367_v8 = vmul.f32 %v3339_v42, %v4747_v12  ;;  %v3369_v2 = vmul.f32 %v3353_v32, %v4753_v53  ;;  %v3430_v3 = vadd.f32 %v3416_v20, %v3396_v33  ;;  %v3431_v24 = vadd.f32 %v3424_v54, %v3397_v44 }
 0x88e   :  { %v3432_v63 = vadd.f32 %v3423_v18, %v3398_v34  ;;  %v3433_v9 = vadd.f32 %v3425_v35, %v3399_v45  ;;  %v3366_v39 = vmul.f32 %v3332_v36, %v4744_v6  ;;  %v3368_v41 = vmul.f32 %v3346_v48, %v4750_v13 }
 0x88f   :  { %v3401_v55 = vmul.f32 %v3390_v16, %v3367_v8  ;;  %v3403_v56 = vmul.f32 %v3391_v25, %v3369_v2  ;;  %v3454_v60 = vcombine.low %v3430_v3, %v3431_v24  ;;  %v3593_v16 = vld [vmem:[%s4895_s5 + $0x50] sm:$0xff]  ;;  %v3587_v25 = vld [vmem:[%s4895_s5 + $0x20] sm:$0xff]  ;;  %v3444_v29 = vsub.s32 7, %v4179_v7 }
 0x890   :  { %v3455_v57 = vcombine.low %v3432_v63, %v3433_v9  ;;  %v3400_v58 = vmul.f32 %v3382_v11, %v3366_v39  ;;  %v3402_v38 = vmul.f32 %v3389_v14, %v3368_v41  ;;  %v3598_v11 = vld [vmem:[%s4895_s5 + $0x78] sm:$0xff]  ;;  %v3596_v14 = vld [vmem:[%s4895_s5 + $0x68] sm:$0xff]  ;;  %v3601_v41 = vsub.s32 5, %v4179_v7 }
 0x891   :  { %v3435_v61 = vadd.f32 %v3424_v54, %v3401_v55  ;;  %v3437_v40 = vadd.f32 %v3425_v35, %v3403_v56  ;;  %v3462_v12 = vrot.slane %v3454_v60, %v4194_v17  ;;  %3980 = vmatprep.subr.mxu0 %v3598_v11  ;;  %v3586_v54 = vld [vmem:[%s4895_s5 + $0x18] sm:$0xff]  ;;  %v3445_v0 = vrot.slane %v4678_v15, %v3444_v29 }
 0x892   :  { %v3469_v53 = vrot.slane %v3455_v57, %v4194_v17  ;;  %v3434_v4 = vadd.f32 %v3416_v20, %v3400_v58  ;;  %v3436_v10 = vadd.f32 %v3423_v18, %v3402_v38  ;;  %3981 = vmatpush3.msra.mxu0 %v3598_v11  ;;  %v3595_v20 = vld [vmem:[%s4895_s5 + $0x60] sm:$0xff]  ;;  %v3592_v18 = vld [vmem:[%s4895_s5 + $0x48] sm:$0xff]  ;;  %v3602_v55 = vrot.slane %v4678_v15, %v3601_v41  ;;  %s4129_s5 = smov [#allocation2]  }
 0x893   :  { %3982 = vmatprep.subr.mxu0 %v3597_v5  ;;  %s3744_s13 = sshll.u32 %s4129_s5, 4  ;;  %s3745_s13 = int_to_ptr.vmem [resolvable:$true] %s3744_s13 }
 0x894   :  { %v3470_v51 = vcombine.low %v3462_v12, %v3469_v53  ;;  %v3471_v50 = vcombine.low %v3434_v4, %v3435_v61  ;;  %v3472_v52 = vcombine.low %v3436_v10, %v3437_v40  ;;  %3983 = vmatpush3.msra.mxu0 %v3597_v5  ;;  %s4091_s14 = scalar_lea.vmem %s3745_s13, 256  ;;  %p4096_p1 = scmp.lt.s32.totalorder %s3745_s13, %s3745_s13 }
 0x895   :  { %3984 = vmatprep.subr.mxu0 %v3596_v14  ;;  %p4092_p0 = scmp.ne.s32.totalorder %s3745_s13, %s4091_s14  ;;  %p4097_p2 = scmp.lt.s32.totalorder %s4091_s14, %s4091_s14 }
 0x896   :  { %3977 = vmatprep.mubr.msk.f32.mxu1 %vm77_vm0, %v3470_v51  ;;  %v3479_v6 = vrot.slane %v3471_v50, %v4194_v17  ;;  %v3486_v13 = vrot.slane %v3472_v52, %v4194_v17  ;;  %3985 = vmatpush3.msra.mxu0 %v3596_v14 }
 0x897   :  { %3986 = vmatprep.subr.mxu0 %v3595_v20  ;;  %p4098_p3 = por %p4097_p2, %p4096_p1 }
 0x898   :  { %v3487_v59 = vcombine.low %v3479_v6, %v3486_v13  ;;  %3987 = vmatpush3.msra.mxu0 %v3595_v20 }
 0x899   :  { %3988 = vmatprep.subr.mxu0 %v3594_v22  ;;  %p4099_p4 = pnand %p4098_p3, %p4092_p0 }
 0x89a   :  { %3978 = vmatmul.mubr.msk.f32.vlgmr.msra.gmra.mxu1 %vm77_vm0, %v3487_v59  ;;  %3989 = vmatpush3.msra.mxu0 %v3594_v22 }
 0x89b   :  { %3990 = vmatprep.subr.mxu0 %v3593_v16 }
 0x89c   :  { %3991 = vmatpush3.msra.mxu0 %v3593_v16 }
 0x89d   :  { %3992 = vmatprep.subr.mxu0 %v3592_v18 }
 0x89e   :  { %3993 = vmatpush3.msra.mxu0 %v3592_v18 }
 0x89f   :  { %3994 = vmatprep.subr.mxu0 %v3591_v19 }
 0x8a0   :  { %3995 = vmatpush3.msra.mxu0 %v3591_v19 }
 0x8a1   :  { %3996 = vmatprep.subr.mxu0 %v3590_v21 }
 0x8a2   :  { %3997 = vmatpush3.msra.mxu0 %v3590_v21 }
 0x8a3   :  { %3998 = vmatprep.subr.mxu0 %v3589_v23 }
 0x8a4   :  { %3999 = vmatpush3.msra.mxu0 %v3589_v23 }
 0x8a5   :  { %4000 = vmatprep.subr.mxu0 %v3588_v1 }
 0x8a6   :  { %4001 = vmatpush3.msra.mxu0 %v3588_v1 }
 0x8a7   :  { %4002 = vmatprep.subr.mxu0 %v3587_v25 }
 0x8a8   :  { %4003 = vmatpush3.msra.mxu0 %v3587_v25 }
 0x8a9   :  { %4004 = vmatprep.subr.mxu0 %v3586_v54 }
 0x8aa   :  { %4005 = vmatpush3.msra.mxu0 %v3586_v54 }
 0x8ab   :  { %4006 = vmatprep.subr.mxu0 %v3585_v47 }
 0x8ac   :  { %4007 = vmatpush3.msra.mxu0 %v3585_v47 }
 0x8ad   :  { %4008 = vmatprep.subr.mxu0 %v3584_v27 }
 0x8ae   :  { %4009 = vmatpush3.msra.mxu0 %v3584_v27 }
 0x8af   :  { %4010 = vmatprep.subr.mxu0 %v3583_v49 }
 0x8b0   :  { %4011 = vmatpush3.msra.mxu0 %v3583_v49 }
 0x95a   :  { %v3979_v35 = vpop.f32.mrf.mxu1 }
 0x95b   :  { %v3564_v42 = vadd.f32 %v3979_v35, %v3445_v0 }
 0x95c   :  { %v3558_v32 = vpop.f32.mrf.mxu1 }
 0x95d   :  { %v3798_v33 = vmul.f32 -1.702, %v3564_v42  ;;  %v3559_v44 = vadd.f32 %v3558_v32, %v3445_v0 }
 0x95f   :  { %v3573_v34 = vmul.f32 1.442695, %v3798_v33  ;;  %v3797_v45 = vmul.f32 -1.702, %v3559_v44 }
 0x961   :  { %4074 = vpow2.f32 %v3573_v34  ;;  %v3571_v36 = vmul.f32 1.442695, %v3797_v45 }
 0x963   :  { %4076 = vpow2.f32 %v3571_v36 }
 0x96e   :  { %v4075_v48 = vpop.eup %4074 }
 0x96f   :  { %v3576_v8 = vadd.f32 1.0, %v4075_v48 }
 0x970   :  { %v4077_v2 = vpop.eup %4076 }
 0x971   :  { %v3575_v3 = vadd.f32 1.0, %v4077_v2  ;;  %4078 = vrcp.f32 %v3576_v8 }
 0x973   :  { %4080 = vrcp.f32 %v3575_v3 }
 0x97e   :  { %v4079_v24 = vpop.eup %4078 }
 0x97f   :  { %v3582_v39 = vmul.f32 %v4079_v24, %v3564_v42 }
 0x980   :  { %v4081_v63 = vpop.eup %4080 }
 0x981   :  { %v3581_v9 = vmul.f32 %v4081_v63, %v3559_v44 }
 0x983   :  { %4012 = vmatprep.mubr.f32.mxu0 %v3581_v9 }
 0x984   :  { %4013 = vmatmul.mubr.f32.vlgmr.msra.gmra.mxu0 %v3582_v39 }
 0xa44   :  { %v4014_v56 = vpop.f32.mrf.mxu0 }
 0xa45   :  { %v3675_v60 = vadd.f32 %v4014_v56, %v3602_v55 }
 0xa46   :  { %v3669_v57 = vpop.f32.mrf.mxu0 }
 0xa47   :  { %v3697_v58 = vcombine.high %v3675_v60, %v3675_v60  ;;  %v3704_v38 = vrot.slane %v3675_v60, %v4194_v17  ;;  %v3670_v61 = vadd.f32 %v3669_v57, %v3602_v55 }
 0xa49   :  { %v3711_v40 = vrot.slane %v3697_v58, %v4194_v17  ;;  %v3712_v12 = vcombine.high %v3704_v38, %v3704_v38  ;;  %v3726_v53 = vadd.f32 %v3704_v38, %v4687_v28  ;;  %v3680_v4 = vcombine.high %v3670_v61, %v3670_v61 }
 0xa4a   :  { %v3687_v10 = vrot.slane %v3670_v61, %v4194_v17 }
 0xa4b   :  { %v3713_v51 = vcombine.high %v3711_v40, %v3711_v40  ;;  %v3727_v7 = vadd.f32 %v3712_v12, %v4692_v26  ;;  %v3728_v15 = vadd.f32 %v3711_v40, %v4698_v62  ;;  %3735 = vst.msk [vmem:[#allocation2 + $0x8] sm:$0x3] %vm3730_vm5, %v3726_v53  ;;  %v3694_v50 = vrot.slane %v3680_v4, %v4194_v17 }
 0xa4c   :  { %v3695_v52 = vcombine.high %v3687_v10, %v3687_v10  ;;  %v3722_v6 = vadd.f32 %v3687_v10, %v4710_v37 }
 0xa4d   :  { %v3729_v13 = vadd.f32 %v3713_v51, %v4703_v31  ;;  %3736 = vst.msk [vmem:[#allocation2 + $0xa] sm:$0x3] %vm3730_vm5, %v3727_v7  ;;  %3737 = vst.msk [vmem:[#allocation2 + $0xc] sm:$0x3] %vm3730_vm5, %v3728_v15  ;;  %v3696_v28 = vcombine.high %v3694_v50, %v3694_v50  ;;  %v3724_v26 = vadd.f32 %v3694_v50, %v4720_v43 }
 0xa4e   :  { %v3723_v62 = vadd.f32 %v3695_v52, %v4715_v30  ;;  %3731 = vst.msk [vmem:[#allocation2] sm:$0x3] %vm3730_vm5, %v3722_v6 }
 0xa4f   :  { %3738 = vst.msk [vmem:[#allocation2 + $0xe] sm:$0x3] %vm3730_vm5, %v3729_v13  ;;  %v3725_v17 = vadd.f32 %v3696_v28, %v4725_v46  ;;  %3733 = vst.msk [vmem:[#allocation2 + $0x4] sm:$0x3] %vm3730_vm5, %v3724_v26 }
 0xa50   :  { %3732 = vst.msk [vmem:[#allocation2 + $0x2] sm:$0x3] %vm3730_vm5, %v3723_v62 }
 0xa51   :  { %3734 = vst.msk [vmem:[#allocation2 + $0x6] sm:$0x3] %vm3730_vm5, %v3725_v17 }
 0xa52   :  { %4102 = shalt.err (!%p4099_p4)
}
 0xa53   :  { %s4130_s15 = smov 32   ;;  %s4131_s16 = smov 2  }
 0xa54   :  { %3750 = dma.vmem_to_hbm [thread:$0]  %s3745_s13, 256, %s4896_s6, [#allocation3], %s4130_s15, %s4130_s15, %s4131_s16  }
 0xa55   :  { %4111 = dma.done.wait [#allocation3], 256  }
 0xa56   :  { %4112 = vsyncadd [#allocation3], 4294967040 }
 0xa57   :  { %3754 = vsyncpa [#allocation3], 1 }

</bundles_post_ra>
